<compile_context>
chip_gen: v6e
topology: v6e:2x2x1
jax: 0.10.0
libtpu: 0.0.40
codegen_flags: <defaults>
</compile_context>

<pallas_src>
import jax
import jax.numpy as jnp
from jax.experimental import pallas as pl
from jax.experimental.pallas import tpu as pltpu


def _round_up(x, m):
    return (x + m - 1) // m * m


def _pad_gate_rows(w, h, hp):
    """Pad a gate-stacked tensor (4*h, ...) -> (4*hp, ...), zero-filling each gate block.

    Keeps each of the i/f/g/o gate blocks starting at a multiple of hp (lane aligned)."""
    if h == hp:
        return w
    parts = jnp.split(w, 4, axis=0)
    pad = [(0, hp - h)] + [(0, 0)] * (w.ndim - 1)
    return jnp.concatenate([jnp.pad(p, pad) for p in parts], axis=0)


def _lstm_recurrence_kernel(gx_ref, w_hh_ref, h_out_ref, h_scr, c_scr):
    """Grid = (B blocks [parallel], T blocks [arbitrary]).

    gx_ref:  (T_BLK, B_BLK, 4*Hp)  precomputed x @ W_ih^T + b (gate/lane padded)
    w_hh_ref:(Hp, 4*Hp)            recurrent weight (transposed, gate/lane padded)
    h_out_ref:(B_BLK, Hp)          final hidden state (lane-dense, written on last T block)
    h_scr/c_scr:(B_BLK, Hp) f32    resident LSTM state
    """
    tb = pl.program_id(1)

    @pl.when(tb == 0)
    def _():
        h_scr[...] = jnp.zeros_like(h_scr)
        c_scr[...] = jnp.zeros_like(c_scr)

    hp = h_scr.shape[1]
    t_blk = gx_ref.shape[0]
    w_hh = w_hh_ref[...]                               # resident for this grid step

    def step(j, carry):
        h, c = carry
        # Only the recurrent projection is on the serial critical path; the input
        # projection + bias was hoisted out and streamed in via gx_ref.
        gates = gx_ref[j].astype(jnp.float32) + jnp.dot(
            h.astype(w_hh.dtype), w_hh, preferred_element_type=jnp.float32)
        # Each gate block starts on a 128-lane boundary (hp is a multiple of 128).
        i_g = jax.nn.sigmoid(gates[:, 0 * hp:1 * hp])
        f_g = jax.nn.sigmoid(gates[:, 1 * hp:2 * hp])
        g_g = jnp.tanh(gates[:, 2 * hp:3 * hp])
        o_g = jax.nn.sigmoid(gates[:, 3 * hp:4 * hp])
        c = f_g * c + i_g * g_g
        h = o_g * jnp.tanh(c)
        return h, c

    # Unrolled inner loop over the timestep block: overlaps EUP/VPU work of step t
    # with the W_hh matmul of step t+1 and amortizes per-grid-step overhead.
    h_f, c_f = jax.lax.fori_loop(0, t_blk, step, (h_scr[...], c_scr[...]),
                                 unroll=True)
    h_scr[...] = h_f
    c_scr[...] = c_f

    @pl.when(tb == pl.num_programs(1) - 1)
    def _():
        h_out_ref[...] = h_f.astype(h_out_ref.dtype)


def text_encoder_forward(tokens, emb_table, w_ih, w_hh, b_ih, b_hh, fc_w, fc_b,
                         *, t_blk=8, compute_dtype=jnp.float32):
    """tokens: (B, T) int32.  Returns (B, H) float32.

    compute_dtype=jnp.bfloat16 halves weight/activation DMA bytes on v6e/v7x (MXU is
    native bf16); state and nonlinearities always stay f32.
    """
    B, T = tokens.shape
    E = emb_table.shape[1]
    H = w_hh.shape[1]

    # ---- MXU / vreg friendly padded sizes --------------------------------------
    Hp = _round_up(H, 128)                 # lane-aligned gates, lane-dense output
    Bp = _round_up(B, 8)                   # sublane-aligned batch
    b_blk = min(Bp, 128)
    Bp = _round_up(Bp, b_blk)
    t_blk = max(1, min(t_blk, T))
    Tp = _round_up(T, t_blk)

    # ---- hoisted input projection: one big parallel matmul in XLA ---------------
    # Time-major gather (transpose only the tiny index array, not the embedded tensor).
    emb_t = emb_table[tokens.T]                                    # (T, B, E)
    w_ih_p = _pad_gate_rows(w_ih, H, Hp)                           # (4Hp, E)
    b_p = _pad_gate_rows(b_ih + b_hh, H, Hp)                       # (4Hp,)
    gates_x = jnp.einsum('tbe,ge->tbg', emb_t, w_ih_p,
                         precision=jax.lax.Precision.HIGHEST) + b_p  # (T, B, 4Hp)
    # Pad batch, and pad *leading* timesteps with zero gates (zero gates leave a
    # zero (h, c) state unchanged, so the result is identical).
    gates_x = jnp.pad(gates_x, ((Tp - T, 0), (0, Bp - B), (0, 0)))
    gates_x = gates_x.astype(compute_dtype)

    # ---- recurrent weight, transposed + gate/lane padded -------------------------
    w_hh_p = _pad_gate_rows(w_hh, H, Hp)                           # (4Hp, H)
    w_hh_p = jnp.pad(w_hh_p, ((0, 0), (0, Hp - H)))                # (4Hp, Hp)
    w_hh_t = w_hh_p.T.astype(compute_dtype)                        # (Hp, 4Hp)

    # ---- VMEM budget (keep v7x's 64 MiB happy at large H) ------------------------
    itemsize = jnp.dtype(compute_dtype).itemsize
    vmem_bytes = (2 * t_blk * b_blk * 4 * Hp * itemsize            # gates_x (double-buffered)
                  + 2 * Hp * 4 * Hp * itemsize                     # w_hh   (double-buffered)
                  + 2 * b_blk * Hp * 4                             # output buffer
                  + 2 * b_blk * Hp * 4)                            # h/c scratch (f32)
    vmem_limit = int(min(max(2 * vmem_bytes + (2 << 20), 16 << 20), 64 << 20))

    nb = Bp // b_blk
    nt = Tp // t_blk

    h_last = pl.pallas_call(
        _lstm_recurrence_kernel,
        out_shape=jax.ShapeDtypeStruct((Bp, Hp), jnp.float32),
        grid_spec=pltpu.PrefetchScalarGridSpec(
            num_scalar_prefetch=0,
            grid=(nb, nt),
            in_specs=[
                pl.BlockSpec((t_blk, b_blk, 4 * Hp), lambda b, t: (t, b, 0)),
                pl.BlockSpec((Hp, 4 * Hp), lambda b, t: (0, 0)),
            ],
            out_specs=pl.BlockSpec((b_blk, Hp), lambda b, t: (b, 0)),
            scratch_shapes=[
                pltpu.VMEM((b_blk, Hp), jnp.float32),   # h state
                pltpu.VMEM((b_blk, Hp), jnp.float32),   # c state
            ],
        ),
        compiler_params=pltpu.CompilerParams(
            dimension_semantics=("parallel", "arbitrary"),   # batch blocks x time
            vmem_limit_bytes=vmem_limit,
        ),
    )(gates_x, w_hh_t)

    # Final Linear on the last hidden state: tiny (B,H)x(H,H) matmul done in XLA so
    # fc weights never occupy VMEM during the recurrence.
    h_real = h_last[:B, :H]
    return jnp.dot(h_real, fc_w.T, precision=jax.lax.Precision.HIGHEST) + fc_b


def text_encoder_reference(tokens, emb_table, w_ih, w_hh, b_ih, b_hh, fc_w, fc_b):
    """Pure-JAX reference matching PyTorch nn.Embedding -> nn.LSTM -> nn.Linear(last)."""
    x = emb_table[tokens]                           # (B, T, E)
    B = x.shape[0]
    H = w_hh.shape[1]
    h0 = jnp.zeros((B, H), jnp.float32)
    c0 = jnp.zeros((B, H), jnp.float32)

    def step(carry, xt):
        h, c = carry
        g = (jnp.dot(xt, w_ih.T, precision=jax.lax.Precision.HIGHEST)
             + jnp.dot(h, w_hh.T, precision=jax.lax.Precision.HIGHEST)
             + b_ih + b_hh)
        i = jax.nn.sigmoid(g[:, :H])
        f = jax.nn.sigmoid(g[:, H:2 * H])
        gg = jnp.tanh(g[:, 2 * H:3 * H])
        o = jax.nn.sigmoid(g[:, 3 * H:])
        c = f * c + i * gg
        h = o * jnp.tanh(c)
        return (h, c), None

    (h, _), _ = jax.lax.scan(step, (h0, c0), jnp.transpose(x, (1, 0, 2)))
    return jnp.dot(h, fc_w.T, precision=jax.lax.Precision.HIGHEST) + fc_b


def init_params(key, vocab_size, embedding_dim, hidden_dim):
    ks = jax.random.split(key, 7)
    scale = 0.1
    emb_table = scale * jax.random.normal(ks[0], (vocab_size, embedding_dim), jnp.float32)
    w_ih = scale * jax.random.normal(ks[1], (4 * hidden_dim, embedding_dim), jnp.float32)
    w_hh = scale * jax.random.normal(ks[2], (4 * hidden_dim, hidden_dim), jnp.float32)
    b_ih = scale * jax.random.normal(ks[3], (4 * hidden_dim,), jnp.float32)
    b_hh = scale * jax.random.normal(ks[4], (4 * hidden_dim,), jnp.float32)
    fc_w = scale * jax.random.normal(ks[5], (hidden_dim, hidden_dim), jnp.float32)
    fc_b = scale * jax.random.normal(ks[6], (hidden_dim,), jnp.float32)
    return emb_table, w_ih, w_hh, b_ih, b_hh, fc_w, fc_b


if __name__ == "__main__":
    VOCAB, EMB, HID = 16, 32, 32
    B, T = 2, 8

    key = jax.random.PRNGKey(0)
    k_params, k_tokens = jax.random.split(key)
    params = init_params(k_params, VOCAB, EMB, HID)
    tokens = jax.random.randint(k_tokens, (B, T), 0, VOCAB, dtype=jnp.int32)

    out = text_encoder_forward(tokens, *params)
    out = jax.block_until_ready(out)
    assert out.shape == (B, HID) and out.dtype == jnp.float32

    ref = jax.block_until_ready(text_encoder_reference(tokens, *params))
    assert bool(jnp.allclose(out, ref, atol=2e-3, rtol=2e-3)), (
        f"max abs diff {float(jnp.max(jnp.abs(out - ref)))}")

    # TODO(synk): like the PyTorch module, assumes a single-layer unidirectional LSTM with a
    # fixed sequence length (no per-sequence length masking / packed sequences).
    print("KERNEL_OK")
</pallas_src>

<mosaic_0001>
module attributes {stable_mosaic.version = 11 : i64} {
  func.func @_lstm_recurrence_kernel(%arg0: i32, %arg1: i32, %arg2: memref<8x8x512xf32, #tpu.memory_space<vmem>>, %arg3: memref<128x512xf32, #tpu.memory_space<vmem>>, %arg4: memref<8x128xf32, #tpu.memory_space<vmem>>, %arg5: memref<8x128xf32, #tpu.memory_space<vmem>>, %arg6: memref<8x128xf32, #tpu.memory_space<vmem>>) attributes {dimension_semantics = [#tpu.dimension_semantics<parallel>, #tpu.dimension_semantics<arbitrary>], iteration_bounds = array<i64: 1, 1>, scalar_prefetch = 0 : i64, scratch_operands = 2 : i64, tpu.core_type = #tpu.core_type<tc>, window_params = [{transform_indices = @transform_0, window_bounds = array<i64: 8, 8, 512>}, {pipeline_mode = #tpu.pipeline_mode<synchronous>, transform_indices = @transform_1, window_bounds = array<i64: 128, 512>}, {transform_indices = @transform_2, window_bounds = array<i64: 8, 128>}]} {
    %c0_i32 = arith.constant 0 : i32
    %0 = arith.cmpi eq, %arg1, %c0_i32 : i32
    %1 = arith.extui %0 : i1 to i32
    %c0_i32_0 = arith.constant 0 : i32
    %2 = arith.cmpi ne, %1, %c0_i32_0 : i32
    scf.if %2 {
      %cst_60 = arith.constant 0.000000e+00 : f32
      %251 = vector.broadcast %cst_60 : f32 to vector<8x128xf32>
      %c0_61 = arith.constant 0 : index
      %c0_62 = arith.constant 0 : index
      %252 = vector.load %arg5[%c0_61, %c0_62] : memref<8x128xf32, #tpu.memory_space<vmem>>, vector<8x128xf32>
      tpu.vector_store %arg5[%c0_61, %c0_62], %251 {strides = array<i32>} : memref<8x128xf32, #tpu.memory_space<vmem>>, vector<8x128xf32>,
      %cst_63 = arith.constant 0.000000e+00 : f32
      %253 = vector.broadcast %cst_63 : f32 to vector<8x128xf32>
      %c0_64 = arith.constant 0 : index
      %c0_65 = arith.constant 0 : index
      %254 = vector.load %arg6[%c0_64, %c0_65] : memref<8x128xf32, #tpu.memory_space<vmem>>, vector<8x128xf32>
      tpu.vector_store %arg6[%c0_64, %c0_65], %253 {strides = array<i32>} : memref<8x128xf32, #tpu.memory_space<vmem>>, vector<8x128xf32>,
    } else {
    }
    %c0 = arith.constant 0 : index
    %c0_1 = arith.constant 0 : index
    %3 = vector.load %arg3[%c0, %c0_1] : memref<128x512xf32, #tpu.memory_space<vmem>>, vector<128x512xf32>
    %c0_2 = arith.constant 0 : index
    %c0_3 = arith.constant 0 : index
    %4 = vector.load %arg5[%c0_2, %c0_3] : memref<8x128xf32, #tpu.memory_space<vmem>>, vector<8x128xf32>
    %c0_4 = arith.constant 0 : index
    %c0_5 = arith.constant 0 : index
    %5 = vector.load %arg6[%c0_4, %c0_5] : memref<8x128xf32, #tpu.memory_space<vmem>>, vector<8x128xf32>
    %c0_i32_6 = arith.constant 0 : i32
    %6 = arith.index_cast %c0_i32_6 : i32 to index
    %c0_7 = arith.constant 0 : index
    %c0_8 = arith.constant 0 : index
    %7 = vector.load %arg2[%6, %c0_7, %c0_8] : memref<8x8x512xf32, #tpu.memory_space<vmem>>, vector<1x8x512xf32>
    %8 = vector.shape_cast %7 : vector<1x8x512xf32> to vector<8x512xf32>
    %cst = arith.constant dense<0.000000e+00> : vector<8x512xf32>
    %9 = tpu.matmul %4, %3, %cst {dimension_numbers = #tpu.dot_dimension_numbers<[1], [0], [0], [1], [0, 0, 1, 1], [], []>} : vector<8x128xf32>, vector<128x512xf32>, vector<8x512xf32> -> vector<8x512xf32>
    %10 = arith.addf %8, %9 : vector<8x512xf32>
    %11 = vector.extract_strided_slice %10 {offsets = [0, 0], sizes = [8, 128], strides = [1, 1]} : vector<8x512xf32> to vector<8x128xf32>
    %12 = arith.negf %11 : vector<8x128xf32>
    %13 = math.exp %12 : vector<8x128xf32>
    %cst_9 = arith.constant 1.000000e+00 : f32
    %14 = vector.broadcast %cst_9 : f32 to vector<8x128xf32>
    %15 = arith.addf %14, %13 : vector<8x128xf32>
    %16 = arith.divf %14, %15 : vector<8x128xf32>
    %17 = vector.extract_strided_slice %10 {offsets = [0, 128], sizes = [8, 128], strides = [1, 1]} : vector<8x512xf32> to vector<8x128xf32>
    %18 = arith.negf %17 : vector<8x128xf32>
    %19 = math.exp %18 : vector<8x128xf32>
    %cst_10 = arith.constant 1.000000e+00 : f32
    %20 = vector.broadcast %cst_10 : f32 to vector<8x128xf32>
    %21 = arith.addf %20, %19 : vector<8x128xf32>
    %22 = arith.divf %20, %21 : vector<8x128xf32>
    %23 = vector.extract_strided_slice %10 {offsets = [0, 256], sizes = [8, 128], strides = [1, 1]} : vector<8x512xf32> to vector<8x128xf32>
    %24 = math.tanh %23 : vector<8x128xf32>
    %25 = vector.extract_strided_slice %10 {offsets = [0, 384], sizes = [8, 128], strides = [1, 1]} : vector<8x512xf32> to vector<8x128xf32>
    %26 = arith.negf %25 : vector<8x128xf32>
    %27 = math.exp %26 : vector<8x128xf32>
    %cst_11 = arith.constant 1.000000e+00 : f32
    %28 = vector.broadcast %cst_11 : f32 to vector<8x128xf32>
    %29 = arith.addf %28, %27 : vector<8x128xf32>
    %30 = arith.divf %28, %29 : vector<8x128xf32>
    %31 = arith.mulf %22, %5 : vector<8x128xf32>
    %32 = arith.mulf %16, %24 : vector<8x128xf32>
    %33 = arith.addf %31, %32 : vector<8x128xf32>
    %34 = math.tanh %33 : vector<8x128xf32>
    %35 = arith.mulf %30, %34 : vector<8x128xf32>
    %c1_i32 = arith.constant 1 : i32
    %36 = arith.index_cast %c1_i32 : i32 to index
    %c0_12 = arith.constant 0 : index
    %c0_13 = arith.constant 0 : index
    %37 = vector.load %arg2[%36, %c0_12, %c0_13] : memref<8x8x512xf32, #tpu.memory_space<vmem>>, vector<1x8x512xf32>
    %38 = vector.shape_cast %37 : vector<1x8x512xf32> to vector<8x512xf32>
    %cst_14 = arith.constant dense<0.000000e+00> : vector<8x512xf32>
    %39 = tpu.matmul %35, %3, %cst_14 {dimension_numbers = #tpu.dot_dimension_numbers<[1], [0], [0], [1], [0, 0, 1, 1], [], []>} : vector<8x128xf32>, vector<128x512xf32>, vector<8x512xf32> -> vector<8x512xf32>
    %40 = arith.addf %38, %39 : vector<8x512xf32>
    %41 = vector.extract_strided_slice %40 {offsets = [0, 0], sizes = [8, 128], strides = [1, 1]} : vector<8x512xf32> to vector<8x128xf32>
    %42 = arith.negf %41 : vector<8x128xf32>
    %43 = math.exp %42 : vector<8x128xf32>
    %cst_15 = arith.constant 1.000000e+00 : f32
    %44 = vector.broadcast %cst_15 : f32 to vector<8x128xf32>
    %45 = arith.addf %44, %43 : vector<8x128xf32>
    %46 = arith.divf %44, %45 : vector<8x128xf32>
    %47 = vector.extract_strided_slice %40 {offsets = [0, 128], sizes = [8, 128], strides = [1, 1]} : vector<8x512xf32> to vector<8x128xf32>
    %48 = arith.negf %47 : vector<8x128xf32>
    %49 = math.exp %48 : vector<8x128xf32>
    %cst_16 = arith.constant 1.000000e+00 : f32
    %50 = vector.broadcast %cst_16 : f32 to vector<8x128xf32>
    %51 = arith.addf %50, %49 : vector<8x128xf32>
    %52 = arith.divf %50, %51 : vector<8x128xf32>
    %53 = vector.extract_strided_slice %40 {offsets = [0, 256], sizes = [8, 128], strides = [1, 1]} : vector<8x512xf32> to vector<8x128xf32>
    %54 = math.tanh %53 : vector<8x128xf32>
    %55 = vector.extract_strided_slice %40 {offsets = [0, 384], sizes = [8, 128], strides = [1, 1]} : vector<8x512xf32> to vector<8x128xf32>
    %56 = arith.negf %55 : vector<8x128xf32>
    %57 = math.exp %56 : vector<8x128xf32>
    %cst_17 = arith.constant 1.000000e+00 : f32
    %58 = vector.broadcast %cst_17 : f32 to vector<8x128xf32>
    %59 = arith.addf %58, %57 : vector<8x128xf32>
    %60 = arith.divf %58, %59 : vector<8x128xf32>
    %61 = arith.mulf %52, %33 : vector<8x128xf32>
    %62 = arith.mulf %46, %54 : vector<8x128xf32>
    %63 = arith.addf %61, %62 : vector<8x128xf32>
    %64 = math.tanh %63 : vector<8x128xf32>
    %65 = arith.mulf %60, %64 : vector<8x128xf32>
    %c2_i32 = arith.constant 2 : i32
    %66 = arith.index_cast %c2_i32 : i32 to index
    %c0_18 = arith.constant 0 : index
    %c0_19 = arith.constant 0 : index
    %67 = vector.load %arg2[%66, %c0_18, %c0_19] : memref<8x8x512xf32, #tpu.memory_space<vmem>>, vector<1x8x512xf32>
    %68 = vector.shape_cast %67 : vector<1x8x512xf32> to vector<8x512xf32>
    %cst_20 = arith.constant dense<0.000000e+00> : vector<8x512xf32>
    %69 = tpu.matmul %65, %3, %cst_20 {dimension_numbers = #tpu.dot_dimension_numbers<[1], [0], [0], [1], [0, 0, 1, 1], [], []>} : vector<8x128xf32>, vector<128x512xf32>, vector<8x512xf32> -> vector<8x512xf32>
    %70 = arith.addf %68, %69 : vector<8x512xf32>
    %71 = vector.extract_strided_slice %70 {offsets = [0, 0], sizes = [8, 128], strides = [1, 1]} : vector<8x512xf32> to vector<8x128xf32>
    %72 = arith.negf %71 : vector<8x128xf32>
    %73 = math.exp %72 : vector<8x128xf32>
    %cst_21 = arith.constant 1.000000e+00 : f32
    %74 = vector.broadcast %cst_21 : f32 to vector<8x128xf32>
    %75 = arith.addf %74, %73 : vector<8x128xf32>
    %76 = arith.divf %74, %75 : vector<8x128xf32>
    %77 = vector.extract_strided_slice %70 {offsets = [0, 128], sizes = [8, 128], strides = [1, 1]} : vector<8x512xf32> to vector<8x128xf32>
    %78 = arith.negf %77 : vector<8x128xf32>
    %79 = math.exp %78 : vector<8x128xf32>
    %cst_22 = arith.constant 1.000000e+00 : f32
    %80 = vector.broadcast %cst_22 : f32 to vector<8x128xf32>
    %81 = arith.addf %80, %79 : vector<8x128xf32>
    %82 = arith.divf %80, %81 : vector<8x128xf32>
    %83 = vector.extract_strided_slice %70 {offsets = [0, 256], sizes = [8, 128], strides = [1, 1]} : vector<8x512xf32> to vector<8x128xf32>
    %84 = math.tanh %83 : vector<8x128xf32>
    %85 = vector.extract_strided_slice %70 {offsets = [0, 384], sizes = [8, 128], strides = [1, 1]} : vector<8x512xf32> to vector<8x128xf32>
    %86 = arith.negf %85 : vector<8x128xf32>
    %87 = math.exp %86 : vector<8x128xf32>
    %cst_23 = arith.constant 1.000000e+00 : f32
    %88 = vector.broadcast %cst_23 : f32 to vector<8x128xf32>
    %89 = arith.addf %88, %87 : vector<8x128xf32>
    %90 = arith.divf %88, %89 : vector<8x128xf32>
    %91 = arith.mulf %82, %63 : vector<8x128xf32>
    %92 = arith.mulf %76, %84 : vector<8x128xf32>
    %93 = arith.addf %91, %92 : vector<8x128xf32>
    %94 = math.tanh %93 : vector<8x128xf32>
    %95 = arith.mulf %90, %94 : vector<8x128xf32>
    %c3_i32 = arith.constant 3 : i32
    %96 = arith.index_cast %c3_i32 : i32 to index
    %c0_24 = arith.constant 0 : index
    %c0_25 = arith.constant 0 : index
    %97 = vector.load %arg2[%96, %c0_24, %c0_25] : memref<8x8x512xf32, #tpu.memory_space<vmem>>, vector<1x8x512xf32>
    %98 = vector.shape_cast %97 : vector<1x8x512xf32> to vector<8x512xf32>
    %cst_26 = arith.constant dense<0.000000e+00> : vector<8x512xf32>
    %99 = tpu.matmul %95, %3, %cst_26 {dimension_numbers = #tpu.dot_dimension_numbers<[1], [0], [0], [1], [0, 0, 1, 1], [], []>} : vector<8x128xf32>, vector<128x512xf32>, vector<8x512xf32> -> vector<8x512xf32>
    %100 = arith.addf %98, %99 : vector<8x512xf32>
    %101 = vector.extract_strided_slice %100 {offsets = [0, 0], sizes = [8, 128], strides = [1, 1]} : vector<8x512xf32> to vector<8x128xf32>
    %102 = arith.negf %101 : vector<8x128xf32>
    %103 = math.exp %102 : vector<8x128xf32>
    %cst_27 = arith.constant 1.000000e+00 : f32
    %104 = vector.broadcast %cst_27 : f32 to vector<8x128xf32>
    %105 = arith.addf %104, %103 : vector<8x128xf32>
    %106 = arith.divf %104, %105 : vector<8x128xf32>
    %107 = vector.extract_strided_slice %100 {offsets = [0, 128], sizes = [8, 128], strides = [1, 1]} : vector<8x512xf32> to vector<8x128xf32>
    %108 = arith.negf %107 : vector<8x128xf32>
    %109 = math.exp %108 : vector<8x128xf32>
    %cst_28 = arith.constant 1.000000e+00 : f32
    %110 = vector.broadcast %cst_28 : f32 to vector<8x128xf32>
    %111 = arith.addf %110, %109 : vector<8x128xf32>
    %112 = arith.divf %110, %111 : vector<8x128xf32>
    %113 = vector.extract_strided_slice %100 {offsets = [0, 256], sizes = [8, 128], strides = [1, 1]} : vector<8x512xf32> to vector<8x128xf32>
    %114 = math.tanh %113 : vector<8x128xf32>
    %115 = vector.extract_strided_slice %100 {offsets = [0, 384], sizes = [8, 128], strides = [1, 1]} : vector<8x512xf32> to vector<8x128xf32>
    %116 = arith.negf %115 : vector<8x128xf32>
    %117 = math.exp %116 : vector<8x128xf32>
    %cst_29 = arith.constant 1.000000e+00 : f32
    %118 = vector.broadcast %cst_29 : f32 to vector<8x128xf32>
    %119 = arith.addf %118, %117 : vector<8x128xf32>
    %120 = arith.divf %118, %119 : vector<8x128xf32>
    %121 = arith.mulf %112, %93 : vector<8x128xf32>
    %122 = arith.mulf %106, %114 : vector<8x128xf32>
    %123 = arith.addf %121, %122 : vector<8x128xf32>
    %124 = math.tanh %123 : vector<8x128xf32>
    %125 = arith.mulf %120, %124 : vector<8x128xf32>
    %c4_i32 = arith.constant 4 : i32
    %126 = arith.index_cast %c4_i32 : i32 to index
    %c0_30 = arith.constant 0 : index
    %c0_31 = arith.constant 0 : index
    %127 = vector.load %arg2[%126, %c0_30, %c0_31] : memref<8x8x512xf32, #tpu.memory_space<vmem>>, vector<1x8x512xf32>
    %128 = vector.shape_cast %127 : vector<1x8x512xf32> to vector<8x512xf32>
    %cst_32 = arith.constant dense<0.000000e+00> : vector<8x512xf32>
    %129 = tpu.matmul %125, %3, %cst_32 {dimension_numbers = #tpu.dot_dimension_numbers<[1], [0], [0], [1], [0, 0, 1, 1], [], []>} : vector<8x128xf32>, vector<128x512xf32>, vector<8x512xf32> -> vector<8x512xf32>
    %130 = arith.addf %128, %129 : vector<8x512xf32>
    %131 = vector.extract_strided_slice %130 {offsets = [0, 0], sizes = [8, 128], strides = [1, 1]} : vector<8x512xf32> to vector<8x128xf32>
    %132 = arith.negf %131 : vector<8x128xf32>
    %133 = math.exp %132 : vector<8x128xf32>
    %cst_33 = arith.constant 1.000000e+00 : f32
    %134 = vector.broadcast %cst_33 : f32 to vector<8x128xf32>
    %135 = arith.addf %134, %133 : vector<8x128xf32>
    %136 = arith.divf %134, %135 : vector<8x128xf32>
    %137 = vector.extract_strided_slice %130 {offsets = [0, 128], sizes = [8, 128], strides = [1, 1]} : vector<8x512xf32> to vector<8x128xf32>
    %138 = arith.negf %137 : vector<8x128xf32>
    %139 = math.exp %138 : vector<8x128xf32>
    %cst_34 = arith.constant 1.000000e+00 : f32
    %140 = vector.broadcast %cst_34 : f32 to vector<8x128xf32>
    %141 = arith.addf %140, %139 : vector<8x128xf32>
    %142 = arith.divf %140, %141 : vector<8x128xf32>
    %143 = vector.extract_strided_slice %130 {offsets = [0, 256], sizes = [8, 128], strides = [1, 1]} : vector<8x512xf32> to vector<8x128xf32>
    %144 = math.tanh %143 : vector<8x128xf32>
    %145 = vector.extract_strided_slice %130 {offsets = [0, 384], sizes = [8, 128], strides = [1, 1]} : vector<8x512xf32> to vector<8x128xf32>
    %146 = arith.negf %145 : vector<8x128xf32>
    %147 = math.exp %146 : vector<8x128xf32>
    %cst_35 = arith.constant 1.000000e+00 : f32
    %148 = vector.broadcast %cst_35 : f32 to vector<8x128xf32>
    %149 = arith.addf %148, %147 : vector<8x128xf32>
    %150 = arith.divf %148, %149 : vector<8x128xf32>
    %151 = arith.mulf %142, %123 : vector<8x128xf32>
    %152 = arith.mulf %136, %144 : vector<8x128xf32>
    %153 = arith.addf %151, %152 : vector<8x128xf32>
    %154 = math.tanh %153 : vector<8x128xf32>
    %155 = arith.mulf %150, %154 : vector<8x128xf32>
    %c5_i32 = arith.constant 5 : i32
    %156 = arith.index_cast %c5_i32 : i32 to index
    %c0_36 = arith.constant 0 : index
    %c0_37 = arith.constant 0 : index
    %157 = vector.load %arg2[%156, %c0_36, %c0_37] : memref<8x8x512xf32, #tpu.memory_space<vmem>>, vector<1x8x512xf32>
    %158 = vector.shape_cast %157 : vector<1x8x512xf32> to vector<8x512xf32>
    %cst_38 = arith.constant dense<0.000000e+00> : vector<8x512xf32>
    %159 = tpu.matmul %155, %3, %cst_38 {dimension_numbers = #tpu.dot_dimension_numbers<[1], [0], [0], [1], [0, 0, 1, 1], [], []>} : vector<8x128xf32>, vector<128x512xf32>, vector<8x512xf32> -> vector<8x512xf32>
    %160 = arith.addf %158, %159 : vector<8x512xf32>
    %161 = vector.extract_strided_slice %160 {offsets = [0, 0], sizes = [8, 128], strides = [1, 1]} : vector<8x512xf32> to vector<8x128xf32>
    %162 = arith.negf %161 : vector<8x128xf32>
    %163 = math.exp %162 : vector<8x128xf32>
    %cst_39 = arith.constant 1.000000e+00 : f32
    %164 = vector.broadcast %cst_39 : f32 to vector<8x128xf32>
    %165 = arith.addf %164, %163 : vector<8x128xf32>
    %166 = arith.divf %164, %165 : vector<8x128xf32>
    %167 = vector.extract_strided_slice %160 {offsets = [0, 128], sizes = [8, 128], strides = [1, 1]} : vector<8x512xf32> to vector<8x128xf32>
    %168 = arith.negf %167 : vector<8x128xf32>
    %169 = math.exp %168 : vector<8x128xf32>
    %cst_40 = arith.constant 1.000000e+00 : f32
    %170 = vector.broadcast %cst_40 : f32 to vector<8x128xf32>
    %171 = arith.addf %170, %169 : vector<8x128xf32>
    %172 = arith.divf %170, %171 : vector<8x128xf32>
    %173 = vector.extract_strided_slice %160 {offsets = [0, 256], sizes = [8, 128], strides = [1, 1]} : vector<8x512xf32> to vector<8x128xf32>
    %174 = math.tanh %173 : vector<8x128xf32>
    %175 = vector.extract_strided_slice %160 {offsets = [0, 384], sizes = [8, 128], strides = [1, 1]} : vector<8x512xf32> to vector<8x128xf32>
    %176 = arith.negf %175 : vector<8x128xf32>
    %177 = math.exp %176 : vector<8x128xf32>
    %cst_41 = arith.constant 1.000000e+00 : f32
    %178 = vector.broadcast %cst_41 : f32 to vector<8x128xf32>
    %179 = arith.addf %178, %177 : vector<8x128xf32>
    %180 = arith.divf %178, %179 : vector<8x128xf32>
    %181 = arith.mulf %172, %153 : vector<8x128xf32>
    %182 = arith.mulf %166, %174 : vector<8x128xf32>
    %183 = arith.addf %181, %182 : vector<8x128xf32>
    %184 = math.tanh %183 : vector<8x128xf32>
    %185 = arith.mulf %180, %184 : vector<8x128xf32>
    %c6_i32 = arith.constant 6 : i32
    %186 = arith.index_cast %c6_i32 : i32 to index
    %c0_42 = arith.constant 0 : index
    %c0_43 = arith.constant 0 : index
    %187 = vector.load %arg2[%186, %c0_42, %c0_43] : memref<8x8x512xf32, #tpu.memory_space<vmem>>, vector<1x8x512xf32>
    %188 = vector.shape_cast %187 : vector<1x8x512xf32> to vector<8x512xf32>
    %cst_44 = arith.constant dense<0.000000e+00> : vector<8x512xf32>
    %189 = tpu.matmul %185, %3, %cst_44 {dimension_numbers = #tpu.dot_dimension_numbers<[1], [0], [0], [1], [0, 0, 1, 1], [], []>} : vector<8x128xf32>, vector<128x512xf32>, vector<8x512xf32> -> vector<8x512xf32>
    %190 = arith.addf %188, %189 : vector<8x512xf32>
    %191 = vector.extract_strided_slice %190 {offsets = [0, 0], sizes = [8, 128], strides = [1, 1]} : vector<8x512xf32> to vector<8x128xf32>
    %192 = arith.negf %191 : vector<8x128xf32>
    %193 = math.exp %192 : vector<8x128xf32>
    %cst_45 = arith.constant 1.000000e+00 : f32
    %194 = vector.broadcast %cst_45 : f32 to vector<8x128xf32>
    %195 = arith.addf %194, %193 : vector<8x128xf32>
    %196 = arith.divf %194, %195 : vector<8x128xf32>
    %197 = vector.extract_strided_slice %190 {offsets = [0, 128], sizes = [8, 128], strides = [1, 1]} : vector<8x512xf32> to vector<8x128xf32>
    %198 = arith.negf %197 : vector<8x128xf32>
    %199 = math.exp %198 : vector<8x128xf32>
    %cst_46 = arith.constant 1.000000e+00 : f32
    %200 = vector.broadcast %cst_46 : f32 to vector<8x128xf32>
    %201 = arith.addf %200, %199 : vector<8x128xf32>
    %202 = arith.divf %200, %201 : vector<8x128xf32>
    %203 = vector.extract_strided_slice %190 {offsets = [0, 256], sizes = [8, 128], strides = [1, 1]} : vector<8x512xf32> to vector<8x128xf32>
    %204 = math.tanh %203 : vector<8x128xf32>
    %205 = vector.extract_strided_slice %190 {offsets = [0, 384], sizes = [8, 128], strides = [1, 1]} : vector<8x512xf32> to vector<8x128xf32>
    %206 = arith.negf %205 : vector<8x128xf32>
    %207 = math.exp %206 : vector<8x128xf32>
    %cst_47 = arith.constant 1.000000e+00 : f32
    %208 = vector.broadcast %cst_47 : f32 to vector<8x128xf32>
    %209 = arith.addf %208, %207 : vector<8x128xf32>
    %210 = arith.divf %208, %209 : vector<8x128xf32>
    %211 = arith.mulf %202, %183 : vector<8x128xf32>
    %212 = arith.mulf %196, %204 : vector<8x128xf32>
    %213 = arith.addf %211, %212 : vector<8x128xf32>
    %214 = math.tanh %213 : vector<8x128xf32>
    %215 = arith.mulf %210, %214 : vector<8x128xf32>
    %c7_i32 = arith.constant 7 : i32
    %216 = arith.index_cast %c7_i32 : i32 to index
    %c0_48 = arith.constant 0 : index
    %c0_49 = arith.constant 0 : index
    %217 = vector.load %arg2[%216, %c0_48, %c0_49] : memref<8x8x512xf32, #tpu.memory_space<vmem>>, vector<1x8x512xf32>
    %218 = vector.shape_cast %217 : vector<1x8x512xf32> to vector<8x512xf32>
    %cst_50 = arith.constant dense<0.000000e+00> : vector<8x512xf32>
    %219 = tpu.matmul %215, %3, %cst_50 {dimension_numbers = #tpu.dot_dimension_numbers<[1], [0], [0], [1], [0, 0, 1, 1], [], []>} : vector<8x128xf32>, vector<128x512xf32>, vector<8x512xf32> -> vector<8x512xf32>
    %220 = arith.addf %218, %219 : vector<8x512xf32>
    %221 = vector.extract_strided_slice %220 {offsets = [0, 0], sizes = [8, 128], strides = [1, 1]} : vector<8x512xf32> to vector<8x128xf32>
    %222 = arith.negf %221 : vector<8x128xf32>
    %223 = math.exp %222 : vector<8x128xf32>
    %cst_51 = arith.constant 1.000000e+00 : f32
    %224 = vector.broadcast %cst_51 : f32 to vector<8x128xf32>
    %225 = arith.addf %224, %223 : vector<8x128xf32>
    %226 = arith.divf %224, %225 : vector<8x128xf32>
    %227 = vector.extract_strided_slice %220 {offsets = [0, 128], sizes = [8, 128], strides = [1, 1]} : vector<8x512xf32> to vector<8x128xf32>
    %228 = arith.negf %227 : vector<8x128xf32>
    %229 = math.exp %228 : vector<8x128xf32>
    %cst_52 = arith.constant 1.000000e+00 : f32
    %230 = vector.broadcast %cst_52 : f32 to vector<8x128xf32>
    %231 = arith.addf %230, %229 : vector<8x128xf32>
    %232 = arith.divf %230, %231 : vector<8x128xf32>
    %233 = vector.extract_strided_slice %220 {offsets = [0, 256], sizes = [8, 128], strides = [1, 1]} : vector<8x512xf32> to vector<8x128xf32>
    %234 = math.tanh %233 : vector<8x128xf32>
    %235 = vector.extract_strided_slice %220 {offsets = [0, 384], sizes = [8, 128], strides = [1, 1]} : vector<8x512xf32> to vector<8x128xf32>
    %236 = arith.negf %235 : vector<8x128xf32>
    %237 = math.exp %236 : vector<8x128xf32>
    %cst_53 = arith.constant 1.000000e+00 : f32
    %238 = vector.broadcast %cst_53 : f32 to vector<8x128xf32>
    %239 = arith.addf %238, %237 : vector<8x128xf32>
    %240 = arith.divf %238, %239 : vector<8x128xf32>
    %241 = arith.mulf %232, %213 : vector<8x128xf32>
    %242 = arith.mulf %226, %234 : vector<8x128xf32>
    %243 = arith.addf %241, %242 : vector<8x128xf32>
    %244 = math.tanh %243 : vector<8x128xf32>
    %245 = arith.mulf %240, %244 : vector<8x128xf32>
    %c8_i32 = arith.constant 8 : i32
    %c0_54 = arith.constant 0 : index
    %c0_55 = arith.constant 0 : index
    %246 = vector.load %arg5[%c0_54, %c0_55] : memref<8x128xf32, #tpu.memory_space<vmem>>, vector<8x128xf32>
    tpu.vector_store %arg5[%c0_54, %c0_55], %245 {strides = array<i32>} : memref<8x128xf32, #tpu.memory_space<vmem>>, vector<8x128xf32>,
    %c0_56 = arith.constant 0 : index
    %c0_57 = arith.constant 0 : index
    %247 = vector.load %arg6[%c0_56, %c0_57] : memref<8x128xf32, #tpu.memory_space<vmem>>, vector<8x128xf32>
    tpu.vector_store %arg6[%c0_56, %c0_57], %243 {strides = array<i32>} : memref<8x128xf32, #tpu.memory_space<vmem>>, vector<8x128xf32>,
    %c0_i32_58 = arith.constant 0 : i32
    %248 = arith.cmpi eq, %arg1, %c0_i32_58 : i32
    %249 = arith.extui %248 : i1 to i32
    %c0_i32_59 = arith.constant 0 : i32
    %250 = arith.cmpi ne, %249, %c0_i32_59 : i32
    scf.if %250 {
      %c0_60 = arith.constant 0 : index
      %c0_61 = arith.constant 0 : index
      %251 = vector.load %arg4[%c0_60, %c0_61] : memref<8x128xf32, #tpu.memory_space<vmem>>, vector<8x128xf32>
      tpu.vector_store %arg4[%c0_60, %c0_61], %245 {strides = array<i32>} : memref<8x128xf32, #tpu.memory_space<vmem>>, vector<8x128xf32>,
    } else {
    }
    return
  }
  func.func @transform_0(%arg0: i32, %arg1: i32) -> (i32, i32, i32) {
    %c0_i32 = arith.constant 0 : i32
    %c0_i32_0 = arith.constant 0 : i32
    return %arg1, %arg0, %c0_i32 : i32, i32, i32
  }
  func.func @transform_1(%arg0: i32, %arg1: i32) -> (i32, i32) {
    %c0_i32 = arith.constant 0 : i32
    %c0_i32_0 = arith.constant 0 : i32
    %c0_i32_1 = arith.constant 0 : i32
    return %c0_i32, %c0_i32_0 : i32, i32
  }
  func.func @transform_2(%arg0: i32, %arg1: i32) -> (i32, i32) {
    %c0_i32 = arith.constant 0 : i32
    %c0_i32_0 = arith.constant 0 : i32
    return %arg0, %c0_i32 : i32, i32
  }
}

</mosaic_0001>

<bundles_post_ra>
// kernel: tpu_custom_call.1
= control target key start
LH: loop header
LB: loop body
LE: loop exit
PB: predicated region body
PF: predicated region fallthrough
CT: control target
= control target key end

     0   :  { %7 = vsyncpa [#allocation5], 0  ;;  %s2661_s0 = inlined_call_operand.hbm [shape: f32[8,8,512], index: 0, kind: input, shape index: {}]   ;;  %s2662_s1 = inlined_call_operand.hbm [shape: f32[128,512], index: 1, kind: input, shape index: {}]   ;;  %s2663_s2 = inlined_call_operand.hbm [shape: f32[8,128], index: 2, kind: output, shape index: {}]  }
   0x1   :  { %8 = vsyncpa [#allocation8], 0 }
   0x2   :  { %9 = vsyncpa [#allocation6], 0  ;;  %s1821_s9 = smov [#allocation4]  }
   0x3   :  { %s15_s10 = sshll.u32 %s1821_s9, 4  ;;  %s16_s10 = int_to_ptr.vmem [resolvable:$true] %s15_s10 }
   0x4   :  { %s1763_s11 = scalar_lea.vmem %s16_s10, 4096  ;;  %p1768_p1 = scmp.lt.s32.totalorder %s16_s10, %s16_s10 }
   0x5   :  { %p1764_p0 = scmp.ne.s32.totalorder %s16_s10, %s1763_s11  ;;  %p1769_p2 = scmp.lt.s32.totalorder %s1763_s11, %s1763_s11 }
   0x7   :  { %p1770_p3 = por %p1769_p2, %p1768_p1 }
   0x9   :  { %p1771_p4 = pnand %p1770_p3, %p1764_p0 }
   0xb   :  { %1774 = shalt.err (!%p1771_p4)
}
   0xc   :  { %s1822_s12 = smov 512   ;;  %s1823_s13 = smov 32  }
   0xd   :  { %21 = dma.hbm_to_vmem [thread:$0]  %s2661_s0, 4096, %s16_s10, [#allocation5], %s1822_s12, %s1822_s12, %s1823_s13  }
   0xe   :  { %s1824_s16 = smov [#allocation7]  }
   0xf   :  { %s27_s17 = sshll.u32 %s1824_s16, 4  ;;  %s28_s17 = int_to_ptr.vmem [resolvable:$true] %s27_s17 }
  0x10   :  { %s1783_s18 = scalar_lea.vmem %s28_s17, 8192  ;;  %p1788_p6 = scmp.lt.s32.totalorder %s28_s17, %s28_s17 }
  0x11   :  { %p1784_p5 = scmp.ne.s32.totalorder %s28_s17, %s1783_s18  ;;  %p1789_p7 = scmp.lt.s32.totalorder %s1783_s18, %s1783_s18 }
  0x13   :  { %p1790_p8 = por %p1789_p7, %p1788_p6 }
  0x15   :  { %p1791_p9 = pnand %p1790_p8, %p1784_p5 }
  0x17   :  { %1794 = shalt.err (!%p1791_p9)
}
  0x18   :  { %33 = dma.hbm_to_vmem [thread:$0]  %s2662_s1, 8192, %s28_s17, [#allocation8], %s1822_s12, %s1822_s12, %s1823_s13  }
  0x19   :  { %1815 = dma.done.wait [#allocation5], 4096  }
  0x1a   :  { %1816 = vsyncadd [#allocation5], 4294963200 }
  0x1b   :  { %1817 = dma.done.wait [#allocation8], 8192  }
  0x1c   :  { %1818 = vsyncadd [#allocation8], 4294959104  ;;  %v2666_v0 = vmov 0.0   ;;  %v1850_v1 = vld [vmem:[#allocation7 + $0x1e8] sm:$0xff]  ;;  %v1852_v2 = vld [vmem:[#allocation7 + $0x1e0] sm:$0xff]  ;;  %s1826_s0 = smov [#allocation9]  }
  0x1d   :  { %180 = vmatprep.mubr.f32.mxu0 %v2666_v0  ;;  %251 = vmatprep.mubr.f32.mxu1 %v2666_v0  ;;  %2733 = vst [vmem:[#allocation13_spill] sm:$0xff] %v1850_v1  ;;  %v1854_v3 = vld [vmem:[#allocation7 + $0x1c8] sm:$0xff]  ;;  %v1857_v4 = vld [vmem:[#allocation7 + $0x1c0] sm:$0xff]  ;;  %v1871_v9 = vld [vmem:[#allocation7 + $0x1f8] sm:$0xff]  ;;  %s1523_s1 = sshll.u32 %s1826_s0, 4  ;;  %s1524_s1 = int_to_ptr.vmem [resolvable:$true] %s1523_s1 }
  0x1e   :  { %116 = vmatprep.subr.mxu0 %v1850_v1  ;;  %v1860_v5 = vld [vmem:[#allocation7 + $0x1a8] sm:$0xff]  ;;  %v1863_v6 = vld [vmem:[#allocation7 + $0x1a0] sm:$0xff]  ;;  %2734 = vst [vmem:[#allocation14_spill] sm:$0xff] %v1871_v9  ;;  %187 = vmatprep.subr.mxu1 %v1871_v9  ;;  %v1877_v11 = vld [vmem:[#allocation7 + $0x1f0] sm:$0xff]  ;;  %s1795_s21 = scalar_lea.vmem %s1524_s1, 128  ;;  %p1800_p11 = scmp.lt.s32.totalorder %s1524_s1, %s1524_s1 }
  0x1f   :  { %117 = vmatpush1.msra.mxu0 %v1852_v2  ;;  %v1866_v7 = vld [vmem:[#allocation7 + $0x188] sm:$0xff]  ;;  %v1869_v8 = vld [vmem:[#allocation7 + $0x180] sm:$0xff]  ;;  %188 = vmatpush1.msra.mxu1 %v1877_v11  ;;  %v1883_v13 = vld [vmem:[#allocation7 + $0x1d8] sm:$0xff]  ;;  %p1796_p10 = scmp.ne.s32.totalorder %s1524_s1, %s1795_s21  ;;  %p1801_p12 = scmp.lt.s32.totalorder %s1795_s21, %s1795_s21 }
  0x20   :  { %118 = vmatprep.subr.mxu0 %v1854_v3  ;;  %v1874_v10 = vld [vmem:[#allocation7 + $0x168] sm:$0xff]  ;;  %v1880_v12 = vld [vmem:[#allocation7 + $0x160] sm:$0xff]  ;;  %v1885_v14 = vld [vmem:[#allocation7 + $0x1d0] sm:$0xff]  ;;  %189 = vmatprep.subr.mxu1 %v1883_v13 }
  0x21   :  { %119 = vmatpush1.msra.mxu0 %v1857_v4  ;;  %v1888_v15 = vld [vmem:[#allocation7 + $0x148] sm:$0xff]  ;;  %v1891_v16 = vld [vmem:[#allocation7 + $0x1b8] sm:$0xff]  ;;  %v1894_v17 = vld [vmem:[#allocation7 + $0x140] sm:$0xff]  ;;  %190 = vmatpush1.msra.mxu1 %v1885_v14  ;;  %p1802_p13 = por %p1801_p12, %p1800_p11 }
  0x22   :  { %120 = vmatprep.subr.mxu0 %v1860_v5  ;;  %v1897_v18 = vld [vmem:[#allocation7 + $0x1b0] sm:$0xff]  ;;  %v1899_v19 = vld [vmem:[#allocation7 + $0x198] sm:$0xff]  ;;  %v1902_v20 = vld [vmem:[#allocation7 + $0x128] sm:$0xff]  ;;  %191 = vmatprep.subr.mxu1 %v1891_v16 }
  0x23   :  { %121 = vmatpush1.msra.mxu0 %v1863_v6  ;;  %v1905_v21 = vld [vmem:[#allocation7 + $0x190] sm:$0xff]  ;;  %v1908_v22 = vld [vmem:[#allocation7 + $0x120] sm:$0xff]  ;;  %192 = vmatpush1.msra.mxu1 %v1897_v18  ;;  %v1911_v23 = vld [vmem:[#allocation7 + $0x178] sm:$0xff]  ;;  %p1803_p0 = pnand %p1802_p13, %p1796_p10 }
  0x24   :  { %122 = vmatprep.subr.mxu0 %v1866_v7  ;;  %v1914_v24 = vld [vmem:[#allocation7 + $0x108] sm:$0xff]  ;;  %193 = vmatprep.subr.mxu1 %v1899_v19  ;;  %v1917_v25 = vld [vmem:[#allocation7 + $0x170] sm:$0xff]  ;;  %v1920_v26 = vld [vmem:[#allocation7 + $0x100] sm:$0xff] }
  0x25   :  { %123 = vmatpush1.msra.mxu0 %v1869_v8  ;;  %194 = vmatpush1.msra.mxu1 %v1905_v21  ;;  %v1923_v27 = vld [vmem:[#allocation7 + $0x158] sm:$0xff]  ;;  %v1926_v28 = vld [vmem:[#allocation7 + $0xe8] sm:$0xff]  ;;  %v1929_v29 = vld [vmem:[#allocation7 + $0x150] sm:$0xff] }
  0x26   :  { %124 = vmatprep.subr.mxu0 %v1874_v10  ;;  %195 = vmatprep.subr.mxu1 %v1911_v23  ;;  %v1932_v30 = vld [vmem:[#allocation7 + $0xe0] sm:$0xff]  ;;  %v1935_v31 = vld [vmem:[#allocation7 + $0x138] sm:$0xff]  ;;  %v1938_v32 = vld [vmem:[#allocation7 + $0xc8] sm:$0xff] }
  0x27   :  { %125 = vmatpush1.msra.mxu0 %v1880_v12  ;;  %196 = vmatpush1.msra.mxu1 %v1917_v25  ;;  %v1941_v33 = vld [vmem:[#allocation7 + $0x130] sm:$0xff]  ;;  %v1944_v34 = vld [vmem:[#allocation7 + $0xc0] sm:$0xff]  ;;  %v1947_v35 = vld [vmem:[#allocation7 + $0x118] sm:$0xff] }
  0x28   :  { %126 = vmatprep.subr.mxu0 %v1888_v15  ;;  %197 = vmatprep.subr.mxu1 %v1923_v27  ;;  %v1950_v36 = vld [vmem:[#allocation7 + $0xa8] sm:$0xff]  ;;  %v1953_v37 = vld [vmem:[#allocation7 + $0x110] sm:$0xff]  ;;  %v1956_v38 = vld [vmem:[#allocation7 + $0xa0] sm:$0xff] }
  0x29   :  { %127 = vmatpush1.msra.mxu0 %v1894_v17  ;;  %198 = vmatpush1.msra.mxu1 %v1929_v29  ;;  %v1959_v39 = vld [vmem:[#allocation7 + $0xf8] sm:$0xff]  ;;  %v1962_v40 = vld [vmem:[#allocation7 + $0x88] sm:$0xff]  ;;  %v1965_v41 = vld [vmem:[#allocation7 + $0xf0] sm:$0xff] }
  0x2a   :  { %128 = vmatprep.subr.mxu0 %v1902_v20  ;;  %199 = vmatprep.subr.mxu1 %v1935_v31  ;;  %v1968_v42 = vld [vmem:[#allocation7 + $0x80] sm:$0xff]  ;;  %v1971_v43 = vld [vmem:[#allocation7 + $0xd8] sm:$0xff]  ;;  %v1974_v44 = vld [vmem:[#allocation7 + $0x68] sm:$0xff] }
  0x2b   :  { %129 = vmatpush1.msra.mxu0 %v1908_v22  ;;  %200 = vmatpush1.msra.mxu1 %v1941_v33  ;;  %2735 = vst [vmem:[#allocation15_spill] sm:$0xff] %v1968_v42  ;;  %2736 = vst [vmem:[#allocation16_spill] sm:$0xff] %v1974_v44  ;;  %v1977_v45 = vld [vmem:[#allocation7 + $0xd0] sm:$0xff]  ;;  %v1980_v46 = vld [vmem:[#allocation7 + $0x60] sm:$0xff] }
  0x2c   :  { %130 = vmatprep.subr.mxu0 %v1914_v24  ;;  %201 = vmatprep.subr.mxu1 %v1947_v35  ;;  %2737 = vst [vmem:[#allocation17_spill] sm:$0xff] %v1980_v46  ;;  %v1983_v47 = vld [vmem:[#allocation7 + $0xb8] sm:$0xff]  ;;  %v1986_v48 = vld [vmem:[#allocation7 + $0x48] sm:$0xff]  ;;  %v1989_v49 = vld [vmem:[#allocation7 + $0xb0] sm:$0xff] }
  0x2d   :  { %131 = vmatpush1.msra.mxu0 %v1920_v26  ;;  %202 = vmatpush1.msra.mxu1 %v1953_v37  ;;  %2738 = vst [vmem:[#allocation18_spill] sm:$0xff] %v1986_v48  ;;  %v1992_v50 = vld [vmem:[#allocation7 + $0x40] sm:$0xff]  ;;  %v1995_v51 = vld [vmem:[#allocation7 + $0x98] sm:$0xff]  ;;  %v1998_v52 = vld [vmem:[#allocation7 + $0x28] sm:$0xff] }
  0x2e   :  { %132 = vmatprep.subr.mxu0 %v1926_v28  ;;  %203 = vmatprep.subr.mxu1 %v1959_v39  ;;  %2739 = vst [vmem:[#allocation19_spill] sm:$0xff] %v1992_v50  ;;  %2740 = vst [vmem:[#allocation20_spill] sm:$0xff] %v1998_v52  ;;  %v2001_v53 = vld [vmem:[#allocation7 + $0x90] sm:$0xff]  ;;  %v2004_v54 = vld [vmem:[#allocation7 + $0x20] sm:$0xff] }
  0x2f   :  { %133 = vmatpush1.msra.mxu0 %v1932_v30  ;;  %204 = vmatpush1.msra.mxu1 %v1965_v41  ;;  %2741 = vst [vmem:[#allocation21_spill] sm:$0xff] %v2001_v53  ;;  %2742 = vst [vmem:[#allocation22_spill] sm:$0xff] %v2004_v54  ;;  %v2007_v55 = vld [vmem:[#allocation7 + $0x78] sm:$0xff]  ;;  %v2010_v56 = vld [vmem:[#allocation7 + $0x8] sm:$0xff] }
  0x30   :  { %134 = vmatprep.subr.mxu0 %v1938_v32  ;;  %205 = vmatprep.subr.mxu1 %v1971_v43  ;;  %2743 = vst [vmem:[#allocation23_spill] sm:$0xff] %v2007_v55  ;;  %2744 = vst [vmem:[#allocation24_spill] sm:$0xff] %v2010_v56  ;;  %v2013_v57 = vld [vmem:[#allocation7 + $0x70] sm:$0xff]  ;;  %v2016_v58 = vld [vmem:[#allocation7] sm:$0xff] }
  0x31   :  { %135 = vmatpush1.msra.mxu0 %v1944_v34  ;;  %206 = vmatpush1.msra.mxu1 %v1977_v45  ;;  %2745 = vst [vmem:[#allocation25_spill] sm:$0xff] %v2013_v57  ;;  %2746 = vst [vmem:[#allocation26_spill] sm:$0xff] %v2016_v58  ;;  %v2019_v59 = vld [vmem:[#allocation7 + $0x58] sm:$0xff]  ;;  %v2023_v60 = vld [vmem:[#allocation7 + $0x50] sm:$0xff] }
  0x32   :  { %136 = vmatprep.subr.mxu0 %v1950_v36  ;;  %207 = vmatprep.subr.mxu1 %v1983_v47  ;;  %2747 = vst [vmem:[#allocation27_spill] sm:$0xff] %v2019_v59  ;;  %2748 = vst [vmem:[#allocation28_spill] sm:$0xff] %v2023_v60  ;;  %v2027_v61 = vld [vmem:[#allocation7 + $0x38] sm:$0xff]  ;;  %v2031_v62 = vld [vmem:[#allocation7 + $0x30] sm:$0xff] }
  0x33   :  { %137 = vmatpush1.msra.mxu0 %v1956_v38  ;;  %208 = vmatpush1.msra.mxu1 %v1989_v49  ;;  %2749 = vst [vmem:[#allocation29_spill] sm:$0xff] %v2027_v61  ;;  %2750 = vst [vmem:[#allocation30_spill] sm:$0xff] %v2031_v62  ;;  %v2035_v63 = vld [vmem:[#allocation7 + $0x18] sm:$0xff] }
  0x34   :  { %138 = vmatprep.subr.mxu0 %v1962_v40  ;;  %209 = vmatprep.subr.mxu1 %v1995_v51  ;;  %2751 = vst [vmem:[#allocation31_spill] sm:$0xff] %v2035_v63 }
  0x35   :  { %139 = vmatpush1.msra.mxu0 %v1968_v42  ;;  %210 = vmatpush1.msra.mxu1 %v2001_v53 }
  0x36   :  { %140 = vmatprep.subr.mxu0 %v1974_v44  ;;  %211 = vmatprep.subr.mxu1 %v2007_v55 }
  0x37   :  { %141 = vmatpush1.msra.mxu0 %v1980_v46  ;;  %212 = vmatpush1.msra.mxu1 %v2013_v57 }
  0x38   :  { %142 = vmatprep.subr.mxu0 %v1986_v48  ;;  %213 = vmatprep.subr.mxu1 %v2019_v59 }
  0x39   :  { %143 = vmatpush1.msra.mxu0 %v1992_v50  ;;  %214 = vmatpush1.msra.mxu1 %v2023_v60 }
  0x3a   :  { %144 = vmatprep.subr.mxu0 %v1998_v52  ;;  %215 = vmatprep.subr.mxu1 %v2027_v61 }
  0x3b   :  { %145 = vmatpush1.msra.mxu0 %v2004_v54  ;;  %v2038_v54 = vld [vmem:[#allocation7 + $0x10] sm:$0xff]  ;;  %216 = vmatpush1.msra.mxu1 %v2031_v62 }
  0x3c   :  { %146 = vmatprep.subr.mxu0 %v2010_v56  ;;  %2752 = vst [vmem:[#allocation32_spill] sm:$0xff] %v2038_v54  ;;  %217 = vmatprep.subr.mxu1 %v2035_v63 }
  0x3d   :  { %147 = vmatpush1.msra.mxu0 %v2016_v58  ;;  %218 = vmatpush1.msra.mxu1 %v2038_v54 }
  0x3e   :  { %181 = vmatmul.mubr.f32.vlgmr.msra.gmra.mxu0 %v2666_v0  ;;  %291 = vmatprep.subr.mxu0 %v1850_v1 }
  0x3f   :  { %292 = vmatpush1.msra.mxu0 %v1852_v2  ;;  %252 = vmatmul.mubr.f32.vlgmr.msra.gmra.mxu1 %v2666_v0  ;;  %v2753_v0 = vld [vmem:[#allocation22_spill] sm:$0xff] }
  0x40   :  { %293 = vmatprep.subr.mxu0 %v1854_v3  ;;  %362 = vmatprep.subr.mxu1 %v1871_v9 }
  0x41   :  { %294 = vmatpush1.msra.mxu0 %v1857_v4  ;;  %363 = vmatpush1.msra.mxu1 %v1877_v11 }
  0x42   :  { %295 = vmatprep.subr.mxu0 %v1860_v5  ;;  %364 = vmatprep.subr.mxu1 %v1883_v13 }
  0x43   :  { %296 = vmatpush1.msra.mxu0 %v1863_v6  ;;  %365 = vmatpush1.msra.mxu1 %v1885_v14 }
  0x44   :  { %297 = vmatprep.subr.mxu0 %v1866_v7  ;;  %366 = vmatprep.subr.mxu1 %v1891_v16 }
  0x45   :  { %298 = vmatpush1.msra.mxu0 %v1869_v8  ;;  %367 = vmatpush1.msra.mxu1 %v1897_v18 }
  0x46   :  { %299 = vmatprep.subr.mxu0 %v1874_v10  ;;  %368 = vmatprep.subr.mxu1 %v1899_v19 }
  0x47   :  { %300 = vmatpush1.msra.mxu0 %v1880_v12  ;;  %369 = vmatpush1.msra.mxu1 %v1905_v21 }
  0x48   :  { %301 = vmatprep.subr.mxu0 %v1888_v15  ;;  %370 = vmatprep.subr.mxu1 %v1911_v23 }
  0x49   :  { %302 = vmatpush1.msra.mxu0 %v1894_v17  ;;  %371 = vmatpush1.msra.mxu1 %v1917_v25 }
  0x4a   :  { %303 = vmatprep.subr.mxu0 %v1902_v20  ;;  %372 = vmatprep.subr.mxu1 %v1923_v27 }
  0x4b   :  { %304 = vmatpush1.msra.mxu0 %v1908_v22  ;;  %373 = vmatpush1.msra.mxu1 %v1929_v29 }
  0x4c   :  { %305 = vmatprep.subr.mxu0 %v1914_v24  ;;  %374 = vmatprep.subr.mxu1 %v1935_v31 }
  0x4d   :  { %306 = vmatpush1.msra.mxu0 %v1920_v26  ;;  %375 = vmatpush1.msra.mxu1 %v1941_v33 }
  0x4e   :  { %307 = vmatprep.subr.mxu0 %v1926_v28  ;;  %376 = vmatprep.subr.mxu1 %v1947_v35 }
  0x4f   :  { %308 = vmatpush1.msra.mxu0 %v1932_v30  ;;  %377 = vmatpush1.msra.mxu1 %v1953_v37 }
  0x50   :  { %309 = vmatprep.subr.mxu0 %v1938_v32  ;;  %378 = vmatprep.subr.mxu1 %v1959_v39 }
  0x51   :  { %310 = vmatpush1.msra.mxu0 %v1944_v34  ;;  %379 = vmatpush1.msra.mxu1 %v1965_v41 }
  0x52   :  { %311 = vmatprep.subr.mxu0 %v1950_v36  ;;  %380 = vmatprep.subr.mxu1 %v1971_v43 }
  0x53   :  { %312 = vmatpush1.msra.mxu0 %v1956_v38  ;;  %381 = vmatpush1.msra.mxu1 %v1977_v45 }
  0x54   :  { %313 = vmatprep.subr.mxu0 %v1962_v40  ;;  %382 = vmatprep.subr.mxu1 %v1983_v47 }
  0x55   :  { %314 = vmatpush1.msra.mxu0 %v1968_v42  ;;  %383 = vmatpush1.msra.mxu1 %v1989_v49 }
  0x56   :  { %315 = vmatprep.subr.mxu0 %v1974_v44  ;;  %384 = vmatprep.subr.mxu1 %v1995_v51 }
  0x57   :  { %316 = vmatpush1.msra.mxu0 %v1980_v46  ;;  %385 = vmatpush1.msra.mxu1 %v2001_v53 }
  0x58   :  { %317 = vmatprep.subr.mxu0 %v1986_v48  ;;  %386 = vmatprep.subr.mxu1 %v2007_v55  ;;  %v2754_v48 = vmov 0.0  }
  0x59   :  { %318 = vmatpush1.msra.mxu0 %v1992_v50  ;;  %387 = vmatpush1.msra.mxu1 %v2013_v57 }
  0x5a   :  { %319 = vmatprep.subr.mxu0 %v1998_v52  ;;  %388 = vmatprep.subr.mxu1 %v2019_v59  ;;  %v113_v52 = vld [vmem:[#allocation4 + $0x8] sm:$0xff] }
  0x5b   :  { %320 = vmatpush1.msra.mxu0 %v2753_v0  ;;  %389 = vmatpush1.msra.mxu1 %v2023_v60  ;;  %v112_v0 = vld [vmem:[#allocation4] sm:$0xff] }
  0x5c   :  { %321 = vmatprep.subr.mxu0 %v2010_v56  ;;  %390 = vmatprep.subr.mxu1 %v2027_v61 }
  0x5d   :  { %322 = vmatpush1.msra.mxu0 %v2016_v58  ;;  %391 = vmatpush1.msra.mxu1 %v2031_v62 }
  0x5e   :  { %355 = vmatprep.mubr.f32.mxu0 %v2754_v48  ;;  %392 = vmatprep.subr.mxu1 %v2035_v63  ;;  %v115_v63 = vld [vmem:[#allocation4 + $0x18] sm:$0xff] }
  0x5f   :  { %426 = vmatprep.mubr.f32.mxu1 %v2754_v48  ;;  %393 = vmatpush1.msra.mxu1 %v2038_v54  ;;  %v114_v48 = vld [vmem:[#allocation4 + $0x10] sm:$0xff] }
  0x60   :  { %466 = vmatprep.subr.mxu0 %v1850_v1  ;;  %537 = vmatprep.subr.mxu1 %v1871_v9 }
  0xfe   :  { %v182_v56 = vpop.f32.mrf.mxu0 }
  0xff   :  { %v258_v61 = vadd.f32 %v182_v56, %v112_v0  ;;  %v253_v59 = vpop.f32.mrf.mxu1 }
 0x100   :  { %v184_v60 = vpop.f32.mrf.mxu0  ;;  %v260_v54 = vadd.f32 %v253_v59, %v114_v48  ;;  %v2760_v59 = vld [vmem:[#allocation18_spill] sm:$0xff] }
 0x101   :  { %v1533_v58 = vmul.f32 -1.442695, %v258_v61  ;;  %v259_v50 = vadd.f32 %v184_v60, %v113_v52  ;;  %v255_v57 = vpop.f32.mrf.mxu1 }
 0x102   :  { %v261_v46 = vadd.f32 %v255_v57, %v115_v63  ;;  %v2759_v57 = vld [vmem:[#allocation25_spill] sm:$0xff]  ;;  %v2761_v63 = vld [vmem:[#allocation27_spill] sm:$0xff] }
 0x103   :  { %1563 = vpow2.f32 %v1533_v58  ;;  %v1534_v62 = vmul.f32 -1.442695, %v259_v50 }
 0x104   :  { %v1535_v55 = vmul.f32 -1.442695, %v261_v46 }
 0x105   :  { %1565 = vpow2.f32 %v1534_v62 }
 0x106   :  { %1567 = vtanh.f32 %v260_v54  ;;  %v2757_v54 = vld [vmem:[#allocation23_spill] sm:$0xff] }
 0x107   :  { %1569 = vpow2.f32 %v1535_v55  ;;  %v2758_v55 = vld [vmem:[#allocation17_spill] sm:$0xff] }
 0x110   :  { %v1564_v1 = vpop.eup %1563 }
 0x111   :  { %v265_v44 = vadd.f32 1.0, %v1564_v1 }
 0x112   :  { %v1566_v9 = vpop.eup %1565 }
 0x113   :  { %1571 = vrcp.f32 %v265_v44  ;;  %v271_v0 = vadd.f32 1.0, %v1566_v9  ;;  %v1568_v56 = vpop.eup %1567  ;;  %v2755_v9 = vld [vmem:[#allocation21_spill] sm:$0xff]  ;;  %v2756_v44 = vld [vmem:[#allocation16_spill] sm:$0xff] }
 0x114   :  { %v1570_v52 = vpop.eup %1569 }
 0x115   :  { %1573 = vrcp.f32 %v271_v0  ;;  %v278_v60 = vadd.f32 1.0, %v1570_v52  ;;  %v2762_v0 = vld [vmem:[#allocation19_spill] sm:$0xff]  ;;  %v2764_v52 = vld [vmem:[#allocation20_spill] sm:$0xff] }
 0x117   :  { %1575 = vrcp.f32 %v278_v60  ;;  %v2767_v60 = vld [vmem:[#allocation30_spill] sm:$0xff] }
 0x120   :  { %v1572_v58 = vpop.eup %1571 }
 0x121   :  { %v282_v62 = vmul.f32 %v1572_v58, %v1568_v56  ;;  %v2763_v56 = vld [vmem:[#allocation28_spill] sm:$0xff]  ;;  %v2765_v58 = vld [vmem:[#allocation29_spill] sm:$0xff] }
 0x122   :  { %v1574_v50 = vpop.eup %1573 }
 0x123   :  { %v281_v61 = vmul.f32 0.0, %v1574_v50  ;;  %v2766_v50 = vld [vmem:[#allocation22_spill] sm:$0xff] }
 0x124   :  { %v1576_v46 = vpop.eup %1575 }
 0x125   :  { %v2112_v53 = vadd.f32 %v282_v62, %v281_v61  ;;  %v2768_v61 = vld [vmem:[#allocation24_spill] sm:$0xff]  ;;  %v2769_v62 = vld [vmem:[#allocation31_spill] sm:$0xff] }
 0x127   :  { %1577 = vtanh.f32 %v2112_v53 }
 0x134   :  { %v1578_v1 = vpop.eup %1577 }
 0x135   :  { %v285_v48 = vmul.f32 %v1578_v1, %v1576_v46  ;;  %v2770_v46 = vld [vmem:[#allocation26_spill] sm:$0xff]  ;;  %v2771_v1 = vmov 0.0  }
 0x137   :  { %356 = vmatmul.mubr.f32.vlgmr.msra.gmra.mxu0 %v285_v48  ;;  %427 = vmatmul.mubr.f32.vlgmr.msra.gmra.mxu1 %v285_v48  ;;  %v2772_v48 = vld [vmem:[#allocation32_spill] sm:$0xff] }
 0x138   :  { %467 = vmatpush1.msra.mxu0 %v1852_v2  ;;  %538 = vmatpush1.msra.mxu1 %v1877_v11 }
 0x139   :  { %468 = vmatprep.subr.mxu0 %v1854_v3  ;;  %539 = vmatprep.subr.mxu1 %v1883_v13 }
 0x13a   :  { %469 = vmatpush1.msra.mxu0 %v1857_v4  ;;  %540 = vmatpush1.msra.mxu1 %v1885_v14 }
 0x13b   :  { %470 = vmatprep.subr.mxu0 %v1860_v5  ;;  %541 = vmatprep.subr.mxu1 %v1891_v16 }
 0x13c   :  { %471 = vmatpush1.msra.mxu0 %v1863_v6  ;;  %542 = vmatpush1.msra.mxu1 %v1897_v18 }
 0x13d   :  { %472 = vmatprep.subr.mxu0 %v1866_v7  ;;  %543 = vmatprep.subr.mxu1 %v1899_v19 }
 0x13e   :  { %473 = vmatpush1.msra.mxu0 %v1869_v8  ;;  %544 = vmatpush1.msra.mxu1 %v1905_v21 }
 0x13f   :  { %474 = vmatprep.subr.mxu0 %v1874_v10  ;;  %545 = vmatprep.subr.mxu1 %v1911_v23 }
 0x140   :  { %475 = vmatpush1.msra.mxu0 %v1880_v12  ;;  %546 = vmatpush1.msra.mxu1 %v1917_v25 }
 0x141   :  { %476 = vmatprep.subr.mxu0 %v1888_v15  ;;  %547 = vmatprep.subr.mxu1 %v1923_v27 }
 0x142   :  { %477 = vmatpush1.msra.mxu0 %v1894_v17  ;;  %548 = vmatpush1.msra.mxu1 %v1929_v29 }
 0x143   :  { %478 = vmatprep.subr.mxu0 %v1902_v20  ;;  %549 = vmatprep.subr.mxu1 %v1935_v31 }
 0x144   :  { %479 = vmatpush1.msra.mxu0 %v1908_v22  ;;  %550 = vmatpush1.msra.mxu1 %v1941_v33 }
 0x145   :  { %480 = vmatprep.subr.mxu0 %v1914_v24  ;;  %551 = vmatprep.subr.mxu1 %v1947_v35 }
 0x146   :  { %481 = vmatpush1.msra.mxu0 %v1920_v26  ;;  %552 = vmatpush1.msra.mxu1 %v1953_v37 }
 0x147   :  { %482 = vmatprep.subr.mxu0 %v1926_v28  ;;  %553 = vmatprep.subr.mxu1 %v1959_v39 }
 0x148   :  { %483 = vmatpush1.msra.mxu0 %v1932_v30  ;;  %554 = vmatpush1.msra.mxu1 %v1965_v41 }
 0x149   :  { %484 = vmatprep.subr.mxu0 %v1938_v32  ;;  %555 = vmatprep.subr.mxu1 %v1971_v43 }
 0x14a   :  { %485 = vmatpush1.msra.mxu0 %v1944_v34  ;;  %556 = vmatpush1.msra.mxu1 %v1977_v45 }
 0x14b   :  { %486 = vmatprep.subr.mxu0 %v1950_v36  ;;  %557 = vmatprep.subr.mxu1 %v1983_v47 }
 0x14c   :  { %487 = vmatpush1.msra.mxu0 %v1956_v38  ;;  %558 = vmatpush1.msra.mxu1 %v1989_v49 }
 0x14d   :  { %488 = vmatprep.subr.mxu0 %v1962_v40  ;;  %559 = vmatprep.subr.mxu1 %v1995_v51 }
 0x14e   :  { %489 = vmatpush1.msra.mxu0 %v1968_v42  ;;  %560 = vmatpush1.msra.mxu1 %v2755_v9 }
 0x14f   :  { %490 = vmatprep.subr.mxu0 %v2756_v44  ;;  %561 = vmatprep.subr.mxu1 %v2757_v54  ;;  %v289_v54 = vld [vmem:[#allocation4 + $0x30] sm:$0xff] }
 0x150   :  { %491 = vmatpush1.msra.mxu0 %v2758_v55  ;;  %562 = vmatpush1.msra.mxu1 %v2759_v57  ;;  %v290_v57 = vld [vmem:[#allocation4 + $0x38] sm:$0xff] }
 0x151   :  { %492 = vmatprep.subr.mxu0 %v2760_v59  ;;  %563 = vmatprep.subr.mxu1 %v2761_v63 }
 0x152   :  { %493 = vmatpush1.msra.mxu0 %v2762_v0  ;;  %564 = vmatpush1.msra.mxu1 %v2763_v56  ;;  %v2773_v56 = vld [vmem:[#allocation13_spill] sm:$0xff] }
 0x153   :  { %494 = vmatprep.subr.mxu0 %v2764_v52  ;;  %565 = vmatprep.subr.mxu1 %v2765_v58  ;;  %v2774_v52 = vld [vmem:[#allocation14_spill] sm:$0xff]  ;;  %v287_v58 = vld [vmem:[#allocation4 + $0x20] sm:$0xff]  ;;  %v288_v0 = vld [vmem:[#allocation4 + $0x28] sm:$0xff] }
 0x154   :  { %495 = vmatpush1.msra.mxu0 %v2766_v50  ;;  %566 = vmatpush1.msra.mxu1 %v2767_v60 }
 0x155   :  { %496 = vmatprep.subr.mxu0 %v2768_v61  ;;  %567 = vmatprep.subr.mxu1 %v2769_v62 }
 0x156   :  { %497 = vmatpush1.msra.mxu0 %v2770_v46  ;;  %530 = vmatprep.mubr.f32.mxu0 %v2771_v1 }
 0x157   :  { %568 = vmatpush1.msra.mxu1 %v2772_v48  ;;  %601 = vmatprep.mubr.f32.mxu1 %v2771_v1 }
 0x158   :  { %641 = vmatprep.subr.mxu0 %v2773_v56  ;;  %712 = vmatprep.subr.mxu1 %v2774_v52 }
 0x1f7   :  { %v357_v50 = vpop.f32.mrf.mxu0  ;;  %v428_v62 = vpop.f32.mrf.mxu1 }
 0x1f8   :  { %v433_v60 = vadd.f32 %v357_v50, %v287_v58  ;;  %v435_v56 = vadd.f32 %v428_v62, %v289_v54  ;;  %v2780_v62 = vld [vmem:[#allocation25_spill] sm:$0xff] }
 0x1f9   :  { %v359_v63 = vpop.f32.mrf.mxu0  ;;  %v430_v55 = vpop.f32.mrf.mxu1 }
 0x1fa   :  { %v1536_v61 = vmul.f32 -1.442695, %v433_v60  ;;  %v434_v59 = vadd.f32 %v359_v63, %v288_v0  ;;  %v436_v48 = vadd.f32 %v430_v55, %v290_v57 }
 0x1fc   :  { %1579 = vpow2.f32 %v1536_v61  ;;  %v1537_v46 = vmul.f32 -1.442695, %v434_v59  ;;  %v1538_v1 = vmul.f32 -1.442695, %v436_v48  ;;  %v2783_v48 = vld [vmem:[#allocation19_spill] sm:$0xff] }
 0x1fe   :  { %1581 = vpow2.f32 %v1537_v46  ;;  %v2781_v46 = vld [vmem:[#allocation18_spill] sm:$0xff] }
 0x1ff   :  { %1583 = vpow2.f32 %v1538_v1  ;;  %v2782_v1 = vld [vmem:[#allocation27_spill] sm:$0xff] }
 0x209   :  { %v1580_v44 = vpop.eup %1579 }
 0x20a   :  { %v440_v9 = vadd.f32 1.0, %v1580_v44 }
 0x20b   :  { %v1582_v52 = vpop.eup %1581 }
 0x20c   :  { %1585 = vrcp.f32 %v440_v9  ;;  %v446_v42 = vadd.f32 1.0, %v1582_v52  ;;  %v1584_v58 = vpop.eup %1583  ;;  %v2777_v9 = vld [vmem:[#allocation16_spill] sm:$0xff]  ;;  %v2779_v52 = vld [vmem:[#allocation17_spill] sm:$0xff] }
 0x20d   :  { %1587 = vtanh.f32 %v435_v56  ;;  %v453_v59 = vadd.f32 1.0, %v1584_v58  ;;  %v2778_v56 = vld [vmem:[#allocation23_spill] sm:$0xff]  ;;  %v2784_v58 = vld [vmem:[#allocation28_spill] sm:$0xff] }
 0x20e   :  { %1589 = vrcp.f32 %v446_v42  ;;  %v2775_v42 = vld [vmem:[#allocation15_spill] sm:$0xff] }
 0x20f   :  { %1591 = vrcp.f32 %v453_v59  ;;  %v2788_v59 = vld [vmem:[#allocation30_spill] sm:$0xff] }
 0x219   :  { %v1586_v63 = vpop.eup %1585 }
 0x21a   :  { %v1588_v0 = vpop.eup %1587 }
 0x21b   :  { %v1590_v50 = vpop.eup %1589  ;;  %v457_v60 = vmul.f32 %v1588_v0, %v1586_v63  ;;  %v2785_v63 = vld [vmem:[#allocation20_spill] sm:$0xff]  ;;  %v2786_v0 = vld [vmem:[#allocation29_spill] sm:$0xff] }
 0x21c   :  { %v456_v61 = vmul.f32 %v1590_v50, %v2112_v53  ;;  %v1592_v44 = vpop.eup %1591  ;;  %v2776_v53 = vld [vmem:[#allocation21_spill] sm:$0xff]  ;;  %v2787_v50 = vld [vmem:[#allocation22_spill] sm:$0xff] }
 0x21e   :  { %v2182_v55 = vadd.f32 %v457_v60, %v456_v61  ;;  %v2789_v60 = vld [vmem:[#allocation24_spill] sm:$0xff]  ;;  %v2790_v61 = vld [vmem:[#allocation31_spill] sm:$0xff] }
 0x220   :  { %1593 = vtanh.f32 %v2182_v55 }
 0x22d   :  { %v1594_v54 = vpop.eup %1593 }
 0x22e   :  { %v460_v57 = vmul.f32 %v1594_v54, %v1592_v44  ;;  %v2791_v44 = vld [vmem:[#allocation26_spill] sm:$0xff]  ;;  %v2792_v54 = vmov 0.0  }
 0x230   :  { %531 = vmatmul.mubr.f32.vlgmr.msra.gmra.mxu0 %v460_v57  ;;  %602 = vmatmul.mubr.f32.vlgmr.msra.gmra.mxu1 %v460_v57  ;;  %v2793_v57 = vld [vmem:[#allocation32_spill] sm:$0xff] }
 0x231   :  { %642 = vmatpush1.msra.mxu0 %v1852_v2  ;;  %713 = vmatpush1.msra.mxu1 %v1877_v11 }
 0x232   :  { %643 = vmatprep.subr.mxu0 %v1854_v3  ;;  %714 = vmatprep.subr.mxu1 %v1883_v13 }
 0x233   :  { %644 = vmatpush1.msra.mxu0 %v1857_v4  ;;  %715 = vmatpush1.msra.mxu1 %v1885_v14 }
 0x234   :  { %645 = vmatprep.subr.mxu0 %v1860_v5  ;;  %716 = vmatprep.subr.mxu1 %v1891_v16 }
 0x235   :  { %646 = vmatpush1.msra.mxu0 %v1863_v6  ;;  %717 = vmatpush1.msra.mxu1 %v1897_v18 }
 0x236   :  { %647 = vmatprep.subr.mxu0 %v1866_v7  ;;  %718 = vmatprep.subr.mxu1 %v1899_v19 }
 0x237   :  { %648 = vmatpush1.msra.mxu0 %v1869_v8  ;;  %719 = vmatpush1.msra.mxu1 %v1905_v21 }
 0x238   :  { %649 = vmatprep.subr.mxu0 %v1874_v10  ;;  %720 = vmatprep.subr.mxu1 %v1911_v23 }
 0x239   :  { %650 = vmatpush1.msra.mxu0 %v1880_v12  ;;  %721 = vmatpush1.msra.mxu1 %v1917_v25 }
 0x23a   :  { %651 = vmatprep.subr.mxu0 %v1888_v15  ;;  %722 = vmatprep.subr.mxu1 %v1923_v27 }
 0x23b   :  { %652 = vmatpush1.msra.mxu0 %v1894_v17  ;;  %723 = vmatpush1.msra.mxu1 %v1929_v29 }
 0x23c   :  { %653 = vmatprep.subr.mxu0 %v1902_v20  ;;  %724 = vmatprep.subr.mxu1 %v1935_v31 }
 0x23d   :  { %654 = vmatpush1.msra.mxu0 %v1908_v22  ;;  %725 = vmatpush1.msra.mxu1 %v1941_v33 }
 0x23e   :  { %655 = vmatprep.subr.mxu0 %v1914_v24  ;;  %726 = vmatprep.subr.mxu1 %v1947_v35 }
 0x23f   :  { %656 = vmatpush1.msra.mxu0 %v1920_v26  ;;  %727 = vmatpush1.msra.mxu1 %v1953_v37 }
 0x240   :  { %657 = vmatprep.subr.mxu0 %v1926_v28  ;;  %728 = vmatprep.subr.mxu1 %v1959_v39 }
 0x241   :  { %658 = vmatpush1.msra.mxu0 %v1932_v30  ;;  %729 = vmatpush1.msra.mxu1 %v1965_v41 }
 0x242   :  { %659 = vmatprep.subr.mxu0 %v1938_v32  ;;  %730 = vmatprep.subr.mxu1 %v1971_v43 }
 0x243   :  { %660 = vmatpush1.msra.mxu0 %v1944_v34  ;;  %731 = vmatpush1.msra.mxu1 %v1977_v45 }
 0x244   :  { %661 = vmatprep.subr.mxu0 %v1950_v36  ;;  %732 = vmatprep.subr.mxu1 %v1983_v47 }
 0x245   :  { %662 = vmatpush1.msra.mxu0 %v1956_v38  ;;  %733 = vmatpush1.msra.mxu1 %v1989_v49 }
 0x246   :  { %663 = vmatprep.subr.mxu0 %v1962_v40  ;;  %734 = vmatprep.subr.mxu1 %v1995_v51 }
 0x247   :  { %664 = vmatpush1.msra.mxu0 %v2775_v42  ;;  %735 = vmatpush1.msra.mxu1 %v2776_v53 }
 0x248   :  { %665 = vmatprep.subr.mxu0 %v2777_v9  ;;  %736 = vmatprep.subr.mxu1 %v2778_v56  ;;  %v464_v56 = vld [vmem:[#allocation4 + $0x50] sm:$0xff] }
 0x249   :  { %666 = vmatpush1.msra.mxu0 %v2779_v52  ;;  %737 = vmatpush1.msra.mxu1 %v2780_v62  ;;  %v465_v62 = vld [vmem:[#allocation4 + $0x58] sm:$0xff] }
 0x24a   :  { %667 = vmatprep.subr.mxu0 %v2781_v46  ;;  %738 = vmatprep.subr.mxu1 %v2782_v1 }
 0x24b   :  { %668 = vmatpush1.msra.mxu0 %v2783_v48  ;;  %739 = vmatpush1.msra.mxu1 %v2784_v58  ;;  %v2794_v58 = vld [vmem:[#allocation13_spill] sm:$0xff] }
 0x24c   :  { %669 = vmatprep.subr.mxu0 %v2785_v63  ;;  %740 = vmatprep.subr.mxu1 %v2786_v0  ;;  %v2795_v63 = vld [vmem:[#allocation14_spill] sm:$0xff]  ;;  %v462_v0 = vld [vmem:[#allocation4 + $0x40] sm:$0xff]  ;;  %v463_v48 = vld [vmem:[#allocation4 + $0x48] sm:$0xff] }
 0x24d   :  { %670 = vmatpush1.msra.mxu0 %v2787_v50  ;;  %741 = vmatpush1.msra.mxu1 %v2788_v59 }
 0x24e   :  { %671 = vmatprep.subr.mxu0 %v2789_v60  ;;  %742 = vmatprep.subr.mxu1 %v2790_v61 }
 0x24f   :  { %672 = vmatpush1.msra.mxu0 %v2791_v44  ;;  %705 = vmatprep.mubr.f32.mxu0 %v2792_v54 }
 0x250   :  { %743 = vmatpush1.msra.mxu1 %v2793_v57  ;;  %776 = vmatprep.mubr.f32.mxu1 %v2792_v54 }
 0x251   :  { %816 = vmatprep.subr.mxu0 %v2794_v58  ;;  %887 = vmatprep.subr.mxu1 %v2795_v63 }
 0x2f0   :  { %v532_v50 = vpop.f32.mrf.mxu0  ;;  %v603_v61 = vpop.f32.mrf.mxu1 }
 0x2f1   :  { %v608_v59 = vadd.f32 %v532_v50, %v462_v0  ;;  %v610_v58 = vadd.f32 %v603_v61, %v464_v56 }
 0x2f2   :  { %v534_v1 = vpop.f32.mrf.mxu0  ;;  %v605_v52 = vpop.f32.mrf.mxu1 }
 0x2f3   :  { %v1539_v60 = vmul.f32 -1.442695, %v608_v59  ;;  %v609_v46 = vadd.f32 %v534_v1, %v463_v48  ;;  %v611_v57 = vadd.f32 %v605_v52, %v465_v62 }
 0x2f5   :  { %1595 = vpow2.f32 %v1539_v60  ;;  %v1540_v44 = vmul.f32 -1.442695, %v609_v46  ;;  %v1541_v54 = vmul.f32 -1.442695, %v611_v57 }
 0x2f7   :  { %1597 = vpow2.f32 %v1540_v44 }
 0x2f8   :  { %1599 = vpow2.f32 %v1541_v54 }
 0x302   :  { %v1596_v9 = vpop.eup %1595 }
 0x303   :  { %v615_v53 = vadd.f32 1.0, %v1596_v9 }
 0x304   :  { %v1598_v63 = vpop.eup %1597 }
 0x305   :  { %1601 = vrcp.f32 %v615_v53  ;;  %v621_v42 = vadd.f32 1.0, %v1598_v63  ;;  %v1600_v0 = vpop.eup %1599 }
 0x306   :  { %1603 = vtanh.f32 %v610_v58  ;;  %v628_v46 = vadd.f32 1.0, %v1600_v0 }
 0x307   :  { %1605 = vrcp.f32 %v621_v42 }
 0x308   :  { %1607 = vrcp.f32 %v628_v46  ;;  %v2333_v46 = vld [vmem:[#allocation7 + $0x1c8] sm:$0xff] }
 0x312   :  { %v1602_v1 = vpop.eup %1601 }
 0x313   :  { %v1604_v48 = vpop.eup %1603 }
 0x314   :  { %v1606_v50 = vpop.eup %1605  ;;  %v632_v59 = vmul.f32 %v1604_v48, %v1602_v1  ;;  %v2327_v48 = vld [vmem:[#allocation7 + $0x1e0] sm:$0xff] }
 0x315   :  { %v631_v60 = vmul.f32 %v1606_v50, %v2182_v55  ;;  %v1608_v9 = vpop.eup %1607  ;;  %v2330_v50 = vld [vmem:[#allocation7 + $0x1f0] sm:$0xff] }
 0x317   :  { %v2252_v52 = vadd.f32 %v632_v59, %v631_v60  ;;  %v2336_v59 = vld [vmem:[#allocation7 + $0x1d8] sm:$0xff]  ;;  %v2339_v60 = vld [vmem:[#allocation7 + $0x1c0] sm:$0xff] }
 0x319   :  { %1609 = vtanh.f32 %v2252_v52 }
 0x326   :  { %v1610_v56 = vpop.eup %1609 }
 0x327   :  { %v635_v62 = vmul.f32 %v1610_v56, %v1608_v9  ;;  %v2345_v9 = vld [vmem:[#allocation7 + $0x1a8] sm:$0xff]  ;;  %v2348_v56 = vld [vmem:[#allocation7 + $0x1b8] sm:$0xff] }
 0x329   :  { %706 = vmatmul.mubr.f32.vlgmr.msra.gmra.mxu0 %v635_v62  ;;  %777 = vmatmul.mubr.f32.vlgmr.msra.gmra.mxu1 %v635_v62  ;;  %v2351_v62 = vld [vmem:[#allocation7 + $0x1a0] sm:$0xff] }
 0x32a   :  { %817 = vmatpush1.msra.mxu0 %v1852_v2  ;;  %888 = vmatpush1.msra.mxu1 %v1877_v11  ;;  %v2796_v2 = vld [vmem:[#allocation15_spill] sm:$0xff] }
 0x32b   :  { %818 = vmatprep.subr.mxu0 %v1854_v3  ;;  %889 = vmatprep.subr.mxu1 %v1883_v13  ;;  %v2797_v3 = vld [vmem:[#allocation21_spill] sm:$0xff]  ;;  %v2804_v11 = vld [vmem:[#allocation19_spill] sm:$0xff]  ;;  %v2806_v13 = vld [vmem:[#allocation20_spill] sm:$0xff] }
 0x32c   :  { %819 = vmatpush1.msra.mxu0 %v1857_v4  ;;  %890 = vmatpush1.msra.mxu1 %v1885_v14  ;;  %v2798_v4 = vld [vmem:[#allocation16_spill] sm:$0xff]  ;;  %v2807_v14 = vld [vmem:[#allocation29_spill] sm:$0xff] }
 0x32d   :  { %820 = vmatprep.subr.mxu0 %v1860_v5  ;;  %891 = vmatprep.subr.mxu1 %v1891_v16  ;;  %v2799_v5 = vld [vmem:[#allocation23_spill] sm:$0xff]  ;;  %v2809_v16 = vld [vmem:[#allocation30_spill] sm:$0xff] }
 0x32e   :  { %821 = vmatpush1.msra.mxu0 %v1863_v6  ;;  %892 = vmatpush1.msra.mxu1 %v1897_v18  ;;  %v2800_v6 = vld [vmem:[#allocation17_spill] sm:$0xff]  ;;  %v2811_v18 = vld [vmem:[#allocation31_spill] sm:$0xff] }
 0x32f   :  { %822 = vmatprep.subr.mxu0 %v1866_v7  ;;  %893 = vmatprep.subr.mxu1 %v1899_v19  ;;  %v2801_v7 = vld [vmem:[#allocation25_spill] sm:$0xff]  ;;  %v2812_v19 = vld [vmem:[#allocation26_spill] sm:$0xff] }
 0x330   :  { %823 = vmatpush1.msra.mxu0 %v1869_v8  ;;  %894 = vmatpush1.msra.mxu1 %v1905_v21  ;;  %v2802_v8 = vld [vmem:[#allocation18_spill] sm:$0xff]  ;;  %v2814_v21 = vld [vmem:[#allocation32_spill] sm:$0xff] }
 0x331   :  { %824 = vmatprep.subr.mxu0 %v1874_v10  ;;  %895 = vmatprep.subr.mxu1 %v1911_v23  ;;  %v2803_v10 = vld [vmem:[#allocation27_spill] sm:$0xff]  ;;  %v2816_v23 = vld [vmem:[#allocation14_spill] sm:$0xff] }
 0x332   :  { %825 = vmatpush1.msra.mxu0 %v1880_v12  ;;  %896 = vmatpush1.msra.mxu1 %v1917_v25  ;;  %v2805_v12 = vld [vmem:[#allocation28_spill] sm:$0xff] }
 0x333   :  { %826 = vmatprep.subr.mxu0 %v1888_v15  ;;  %897 = vmatprep.subr.mxu1 %v1923_v27  ;;  %v2808_v15 = vld [vmem:[#allocation22_spill] sm:$0xff] }
 0x334   :  { %827 = vmatpush1.msra.mxu0 %v1894_v17  ;;  %898 = vmatpush1.msra.mxu1 %v1929_v29  ;;  %v2810_v17 = vld [vmem:[#allocation24_spill] sm:$0xff] }
 0x335   :  { %828 = vmatprep.subr.mxu0 %v1902_v20  ;;  %899 = vmatprep.subr.mxu1 %v1935_v31  ;;  %v2813_v20 = vmov 0.0  }
 0x336   :  { %829 = vmatpush1.msra.mxu0 %v1908_v22  ;;  %900 = vmatpush1.msra.mxu1 %v1941_v33  ;;  %v2319_v22 = vld [vmem:[#allocation7 + $0x1e8] sm:$0xff]  ;;  %v640_v33 = vld [vmem:[#allocation4 + $0x78] sm:$0xff] }
 0x337   :  { %830 = vmatprep.subr.mxu0 %v1914_v24  ;;  %901 = vmatprep.subr.mxu1 %v1947_v35  ;;  %2815 = vst [vmem:[#allocation13_spill] sm:$0xff] %v2319_v22  ;;  %v637_v24 = vld [vmem:[#allocation4 + $0x60] sm:$0xff] }
 0x338   :  { %831 = vmatpush1.msra.mxu0 %v1920_v26  ;;  %902 = vmatpush1.msra.mxu1 %v1953_v37  ;;  %v638_v26 = vld [vmem:[#allocation4 + $0x68] sm:$0xff] }
 0x339   :  { %832 = vmatprep.subr.mxu0 %v1926_v28  ;;  %903 = vmatprep.subr.mxu1 %v1959_v39 }
 0x33a   :  { %833 = vmatpush1.msra.mxu0 %v1932_v30  ;;  %904 = vmatpush1.msra.mxu1 %v1965_v41 }
 0x33b   :  { %834 = vmatprep.subr.mxu0 %v1938_v32  ;;  %905 = vmatprep.subr.mxu1 %v1971_v43 }
 0x33c   :  { %835 = vmatpush1.msra.mxu0 %v1944_v34  ;;  %906 = vmatpush1.msra.mxu1 %v1977_v45 }
 0x33d   :  { %836 = vmatprep.subr.mxu0 %v1950_v36  ;;  %907 = vmatprep.subr.mxu1 %v1983_v47  ;;  %v639_v36 = vld [vmem:[#allocation4 + $0x70] sm:$0xff] }
 0x33e   :  { %837 = vmatpush1.msra.mxu0 %v1956_v38  ;;  %908 = vmatpush1.msra.mxu1 %v1989_v49 }
 0x33f   :  { %838 = vmatprep.subr.mxu0 %v1962_v40  ;;  %909 = vmatprep.subr.mxu1 %v1995_v51 }
 0x340   :  { %839 = vmatpush1.msra.mxu0 %v2796_v2  ;;  %910 = vmatpush1.msra.mxu1 %v2797_v3  ;;  %v2354_v2 = vld [vmem:[#allocation7 + $0x1b0] sm:$0xff] }
 0x341   :  { %840 = vmatprep.subr.mxu0 %v2798_v4  ;;  %911 = vmatprep.subr.mxu1 %v2799_v5  ;;  %v2357_v4 = vld [vmem:[#allocation7 + $0x188] sm:$0xff] }
 0x342   :  { %841 = vmatpush1.msra.mxu0 %v2800_v6  ;;  %912 = vmatpush1.msra.mxu1 %v2801_v7  ;;  %v2360_v6 = vld [vmem:[#allocation7 + $0x198] sm:$0xff] }
 0x343   :  { %842 = vmatprep.subr.mxu0 %v2802_v8  ;;  %913 = vmatprep.subr.mxu1 %v2803_v10  ;;  %v2363_v8 = vld [vmem:[#allocation7 + $0x180] sm:$0xff] }
 0x344   :  { %843 = vmatpush1.msra.mxu0 %v2804_v11  ;;  %914 = vmatpush1.msra.mxu1 %v2805_v12  ;;  %v2366_v11 = vld [vmem:[#allocation7 + $0x190] sm:$0xff] }
 0x345   :  { %844 = vmatprep.subr.mxu0 %v2806_v13  ;;  %915 = vmatprep.subr.mxu1 %v2807_v14  ;;  %v2369_v13 = vld [vmem:[#allocation7 + $0x168] sm:$0xff] }
 0x346   :  { %845 = vmatpush1.msra.mxu0 %v2808_v15  ;;  %916 = vmatpush1.msra.mxu1 %v2809_v16 }
 0x347   :  { %846 = vmatprep.subr.mxu0 %v2810_v17  ;;  %917 = vmatprep.subr.mxu1 %v2811_v18 }
 0x348   :  { %847 = vmatpush1.msra.mxu0 %v2812_v19  ;;  %880 = vmatprep.mubr.f32.mxu0 %v2813_v20 }
 0x349   :  { %918 = vmatpush1.msra.mxu1 %v2814_v21  ;;  %951 = vmatprep.mubr.f32.mxu1 %v2813_v20 }
 0x34a   :  { %991 = vmatprep.subr.mxu0 %v2319_v22  ;;  %1062 = vmatprep.subr.mxu1 %v2816_v23  ;;  %v2372_v23 = vld [vmem:[#allocation7 + $0x178] sm:$0xff] }
 0x3e9   :  { %v707_v25 = vpop.f32.mrf.mxu0  ;;  %v778_v31 = vpop.f32.mrf.mxu1 }
 0x3ea   :  { %v783_v27 = vadd.f32 %v707_v25, %v637_v24  ;;  %v785_v39 = vadd.f32 %v778_v31, %v639_v36  ;;  %v2375_v24 = vld [vmem:[#allocation7 + $0x160] sm:$0xff]  ;;  %v2378_v25 = vld [vmem:[#allocation7 + $0x170] sm:$0xff]  ;;  %v2396_v31 = vld [vmem:[#allocation7 + $0x138] sm:$0xff] }
 0x3eb   :  { %v709_v28 = vpop.f32.mrf.mxu0  ;;  %v780_v34 = vpop.f32.mrf.mxu1  ;;  %v2411_v36 = vld [vmem:[#allocation7 + $0x100] sm:$0xff] }
 0x3ec   :  { %v1542_v29 = vmul.f32 -1.442695, %v783_v27  ;;  %v784_v30 = vadd.f32 %v709_v28, %v638_v26  ;;  %v786_v35 = vadd.f32 %v780_v34, %v640_v33  ;;  %v2381_v26 = vld [vmem:[#allocation7 + $0x148] sm:$0xff]  ;;  %v2384_v27 = vld [vmem:[#allocation7 + $0x158] sm:$0xff]  ;;  %v2387_v28 = vld [vmem:[#allocation7 + $0x140] sm:$0xff] }
 0x3ed   :  { %v2402_v33 = vld [vmem:[#allocation7 + $0x130] sm:$0xff]  ;;  %v2405_v34 = vld [vmem:[#allocation7 + $0x108] sm:$0xff] }
 0x3ee   :  { %1611 = vpow2.f32 %v1542_v29  ;;  %v1543_v32 = vmul.f32 -1.442695, %v784_v30  ;;  %v1544_v37 = vmul.f32 -1.442695, %v786_v35  ;;  %v2390_v29 = vld [vmem:[#allocation7 + $0x150] sm:$0xff]  ;;  %v2393_v30 = vld [vmem:[#allocation7 + $0x128] sm:$0xff] }
 0x3ef   :  { %v2408_v35 = vld [vmem:[#allocation7 + $0x118] sm:$0xff] }
 0x3f0   :  { %1613 = vpow2.f32 %v1543_v32  ;;  %v2399_v32 = vld [vmem:[#allocation7 + $0x120] sm:$0xff] }
 0x3f1   :  { %1615 = vpow2.f32 %v1544_v37  ;;  %v2414_v37 = vld [vmem:[#allocation7 + $0x110] sm:$0xff] }
 0x3fb   :  { %v1612_v38 = vpop.eup %1611 }
 0x3fc   :  { %v790_v40 = vadd.f32 1.0, %v1612_v38  ;;  %v2417_v38 = vld [vmem:[#allocation7 + $0xe8] sm:$0xff] }
 0x3fd   :  { %v1614_v41 = vpop.eup %1613 }
 0x3fe   :  { %1617 = vrcp.f32 %v790_v40  ;;  %v796_v43 = vadd.f32 1.0, %v1614_v41  ;;  %v1616_v55 = vpop.eup %1615  ;;  %v2423_v40 = vld [vmem:[#allocation7 + $0xe0] sm:$0xff]  ;;  %v2426_v41 = vld [vmem:[#allocation7 + $0xf0] sm:$0xff] }
 0x3ff   :  { %1619 = vtanh.f32 %v785_v39  ;;  %v803_v61 = vadd.f32 1.0, %v1616_v55  ;;  %v2420_v39 = vld [vmem:[#allocation7 + $0xf8] sm:$0xff] }
 0x400   :  { %1621 = vrcp.f32 %v796_v43  ;;  %v2429_v43 = vld [vmem:[#allocation7 + $0xc8] sm:$0xff]  ;;  %v2432_v55 = vld [vmem:[#allocation7 + $0xd8] sm:$0xff] }
 0x401   :  { %1623 = vrcp.f32 %v803_v61  ;;  %v2447_v61 = vld [vmem:[#allocation7 + $0x88] sm:$0xff] }
 0x40b   :  { %v1618_v42 = vpop.eup %1617 }
 0x40c   :  { %v1620_v53 = vpop.eup %1619 }
 0x40d   :  { %v1622_v63 = vpop.eup %1621  ;;  %v807_v44 = vmul.f32 %v1620_v53, %v1618_v42  ;;  %v2435_v42 = vld [vmem:[#allocation7 + $0xc0] sm:$0xff]  ;;  %v2439_v53 = vld [vmem:[#allocation7 + $0xa8] sm:$0xff] }
 0x40e   :  { %v806_v54 = vmul.f32 %v1622_v63, %v2252_v52  ;;  %v1624_v58 = vpop.eup %1623  ;;  %v2342_v52 = vld [vmem:[#allocation7 + $0x1d0] sm:$0xff]  ;;  %v2443_v63 = vld [vmem:[#allocation7 + $0xa0] sm:$0xff] }
 0x410   :  { %v2324_v57 = vadd.f32 %v807_v44, %v806_v54  ;;  %v2451_v44 = vld [vmem:[#allocation7 + $0x80] sm:$0xff] }
 0x411   :  { %2817 = vst [vmem:[#allocation15_spill] sm:$0xff] %v2451_v44 }
 0x412   :  { %1625 = vtanh.f32 %v2324_v57 }
 0x41f   :  { %v1626_v0 = vpop.eup %1625 }
 0x420   :  { %v810_v1 = vmul.f32 %v1626_v0, %v1624_v58  ;;  %v814_v0 = vld [vmem:[#allocation4 + $0x90] sm:$0xff] }
 0x422   :  { %881 = vmatmul.mubr.f32.vlgmr.msra.gmra.mxu0 %v810_v1  ;;  %952 = vmatmul.mubr.f32.vlgmr.msra.gmra.mxu1 %v810_v1 }
 0x423   :  { %992 = vmatpush1.msra.mxu0 %v2327_v48  ;;  %1063 = vmatpush1.msra.mxu1 %v2330_v50 }
 0x424   :  { %993 = vmatprep.subr.mxu0 %v2333_v46  ;;  %1064 = vmatprep.subr.mxu1 %v2336_v59 }
 0x425   :  { %994 = vmatpush1.msra.mxu0 %v2339_v60  ;;  %1065 = vmatpush1.msra.mxu1 %v2342_v52 }
 0x426   :  { %995 = vmatprep.subr.mxu0 %v2345_v9  ;;  %1066 = vmatprep.subr.mxu1 %v2348_v56 }
 0x427   :  { %996 = vmatpush1.msra.mxu0 %v2351_v62  ;;  %1067 = vmatpush1.msra.mxu1 %v2354_v2 }
 0x428   :  { %997 = vmatprep.subr.mxu0 %v2357_v4  ;;  %1068 = vmatprep.subr.mxu1 %v2360_v6 }
 0x429   :  { %998 = vmatpush1.msra.mxu0 %v2363_v8  ;;  %1069 = vmatpush1.msra.mxu1 %v2366_v11 }
 0x42a   :  { %999 = vmatprep.subr.mxu0 %v2369_v13  ;;  %1070 = vmatprep.subr.mxu1 %v2372_v23 }
 0x42b   :  { %1000 = vmatpush1.msra.mxu0 %v2375_v24  ;;  %1071 = vmatpush1.msra.mxu1 %v2378_v25 }
 0x42c   :  { %1001 = vmatprep.subr.mxu0 %v2381_v26  ;;  %1072 = vmatprep.subr.mxu1 %v2384_v27 }
 0x42d   :  { %1002 = vmatpush1.msra.mxu0 %v2387_v28  ;;  %1073 = vmatpush1.msra.mxu1 %v2390_v29 }
 0x42e   :  { %1003 = vmatprep.subr.mxu0 %v2393_v30  ;;  %1074 = vmatprep.subr.mxu1 %v2396_v31 }
 0x42f   :  { %1004 = vmatpush1.msra.mxu0 %v2399_v32  ;;  %1075 = vmatpush1.msra.mxu1 %v2402_v33 }
 0x430   :  { %1005 = vmatprep.subr.mxu0 %v2405_v34  ;;  %1076 = vmatprep.subr.mxu1 %v2408_v35 }
 0x431   :  { %1006 = vmatpush1.msra.mxu0 %v2411_v36  ;;  %1077 = vmatpush1.msra.mxu1 %v2414_v37 }
 0x432   :  { %1007 = vmatprep.subr.mxu0 %v2417_v38  ;;  %1078 = vmatprep.subr.mxu1 %v2420_v39 }
 0x433   :  { %1008 = vmatpush1.msra.mxu0 %v2423_v40  ;;  %1079 = vmatpush1.msra.mxu1 %v2426_v41 }
 0x434   :  { %1009 = vmatprep.subr.mxu0 %v2429_v43  ;;  %1080 = vmatprep.subr.mxu1 %v2432_v55 }
 0x435   :  { %1010 = vmatpush1.msra.mxu0 %v2435_v42  ;;  %1081 = vmatpush1.msra.mxu1 %v1977_v45  ;;  %v2455_v45 = vld [vmem:[#allocation7 + $0x68] sm:$0xff] }
 0x436   :  { %1011 = vmatprep.subr.mxu0 %v2439_v53  ;;  %1082 = vmatprep.subr.mxu1 %v1983_v47  ;;  %2818 = vst [vmem:[#allocation21_spill] sm:$0xff] %v2455_v45  ;;  %v2459_v47 = vld [vmem:[#allocation7 + $0x60] sm:$0xff] }
 0x437   :  { %1012 = vmatpush1.msra.mxu0 %v2443_v63  ;;  %1083 = vmatpush1.msra.mxu1 %v1989_v49  ;;  %2819 = vst [vmem:[#allocation16_spill] sm:$0xff] %v2459_v47  ;;  %v2463_v49 = vld [vmem:[#allocation7 + $0x48] sm:$0xff] }
 0x438   :  { %1013 = vmatprep.subr.mxu0 %v2447_v61  ;;  %1084 = vmatprep.subr.mxu1 %v1995_v51  ;;  %2820 = vst [vmem:[#allocation23_spill] sm:$0xff] %v2463_v49  ;;  %v2467_v51 = vld [vmem:[#allocation7 + $0x40] sm:$0xff] }
 0x439   :  { %1014 = vmatpush1.msra.mxu0 %v2451_v44  ;;  %1085 = vmatpush1.msra.mxu1 %v2797_v3  ;;  %2821 = vst [vmem:[#allocation17_spill] sm:$0xff] %v2467_v51  ;;  %v2471_v3 = vld [vmem:[#allocation7 + $0x28] sm:$0xff] }
 0x43a   :  { %1015 = vmatprep.subr.mxu0 %v2455_v45  ;;  %1086 = vmatprep.subr.mxu1 %v2799_v5  ;;  %2822 = vst [vmem:[#allocation25_spill] sm:$0xff] %v2471_v3  ;;  %v2484_v5 = vld [vmem:[#allocation7 + $0x1f8] sm:$0xff] }
 0x43b   :  { %1016 = vmatpush1.msra.mxu0 %v2459_v47  ;;  %1087 = vmatpush1.msra.mxu1 %v2801_v7  ;;  %2823 = vst [vmem:[#allocation18_spill] sm:$0xff] %v2484_v5  ;;  %v812_v7 = vld [vmem:[#allocation4 + $0x80] sm:$0xff] }
 0x43c   :  { %1017 = vmatprep.subr.mxu0 %v2463_v49  ;;  %1088 = vmatprep.subr.mxu1 %v2803_v10 }
 0x43d   :  { %1018 = vmatpush1.msra.mxu0 %v2467_v51  ;;  %1089 = vmatpush1.msra.mxu1 %v2805_v12  ;;  %v813_v12 = vld [vmem:[#allocation4 + $0x88] sm:$0xff] }
 0x43e   :  { %1019 = vmatprep.subr.mxu0 %v2471_v3  ;;  %1090 = vmatprep.subr.mxu1 %v2807_v14 }
 0x43f   :  { %1020 = vmatpush1.msra.mxu0 %v2808_v15  ;;  %1091 = vmatpush1.msra.mxu1 %v2809_v16 }
 0x440   :  { %1021 = vmatprep.subr.mxu0 %v2810_v17  ;;  %1092 = vmatprep.subr.mxu1 %v2811_v18 }
 0x441   :  { %1022 = vmatpush1.msra.mxu0 %v2812_v19  ;;  %1055 = vmatprep.mubr.f32.mxu0 %v2813_v20 }
 0x442   :  { %1093 = vmatpush1.msra.mxu1 %v2814_v21  ;;  %1126 = vmatprep.mubr.f32.mxu1 %v2813_v20  ;;  %v815_v21 = vld [vmem:[#allocation4 + $0x98] sm:$0xff] }
 0x443   :  { %1166 = vmatprep.subr.mxu0 %v2319_v22  ;;  %1237 = vmatprep.subr.mxu1 %v2484_v5 }
 0x4e2   :  { %v882_v10 = vpop.f32.mrf.mxu0  ;;  %v953_v18 = vpop.f32.mrf.mxu1 }
 0x4e3   :  { %v958_v14 = vadd.f32 %v882_v10, %v812_v7  ;;  %v960_v20 = vadd.f32 %v953_v18, %v814_v0  ;;  %v2556_v0 = vld [vmem:[#allocation7 + $0x58] sm:$0xff] }
 0x4e4   :  { %v884_v15 = vpop.f32.mrf.mxu0  ;;  %v955_v54 = vpop.f32.mrf.mxu1  ;;  %2827 = vst [vmem:[#allocation20_spill] sm:$0xff] %v2556_v0 }
 0x4e5   :  { %v1545_v16 = vmul.f32 -1.442695, %v958_v14  ;;  %v959_v17 = vadd.f32 %v884_v15, %v813_v12  ;;  %v961_v58 = vadd.f32 %v955_v54, %v815_v21  ;;  %v2548_v54 = vld [vmem:[#allocation7 + $0x78] sm:$0xff] }
 0x4e6   :  { %2825 = vst [vmem:[#allocation19_spill] sm:$0xff] %v2548_v54 }
 0x4e7   :  { %1627 = vpow2.f32 %v1545_v16  ;;  %v1546_v19 = vmul.f32 -1.442695, %v959_v17  ;;  %v1547_v1 = vmul.f32 -1.442695, %v961_v58  ;;  %v2552_v58 = vld [vmem:[#allocation7 + $0x70] sm:$0xff] }
 0x4e8   :  { %2826 = vst [vmem:[#allocation28_spill] sm:$0xff] %v2552_v58 }
 0x4e9   :  { %1629 = vpow2.f32 %v1546_v19 }
 0x4ea   :  { %1631 = vpow2.f32 %v1547_v1  ;;  %v2828_v1 = vld [vmem:[#allocation17_spill] sm:$0xff] }
 0x4f4   :  { %v1628_v22 = vpop.eup %1627 }
 0x4f5   :  { %v965_v3 = vadd.f32 1.0, %v1628_v22 }
 0x4f6   :  { %v1630_v5 = vpop.eup %1629 }
 0x4f7   :  { %1633 = vrcp.f32 %v965_v3  ;;  %v971_v51 = vadd.f32 1.0, %v1630_v5  ;;  %v1632_v7 = vpop.eup %1631  ;;  %v2540_v3 = vld [vmem:[#allocation7 + $0x98] sm:$0xff]  ;;  %v2544_v5 = vld [vmem:[#allocation7 + $0x90] sm:$0xff] }
 0x4f8   :  { %1635 = vtanh.f32 %v960_v20  ;;  %v978_v15 = vadd.f32 1.0, %v1632_v7  ;;  %v2528_v20 = vld [vmem:[#allocation7 + $0xd0] sm:$0xff]  ;;  %2824 = vst [vmem:[#allocation27_spill] sm:$0xff] %v2544_v5 }
 0x4f9   :  { %1637 = vrcp.f32 %v971_v51  ;;  %v2536_v51 = vld [vmem:[#allocation7 + $0xb0] sm:$0xff] }
 0x4fa   :  { %1639 = vrcp.f32 %v978_v15  ;;  %v2560_v7 = vld [vmem:[#allocation7 + $0x50] sm:$0xff] }
 0x4fb   :  { %2829 = vst [vmem:[#allocation29_spill] sm:$0xff] %v2560_v7  ;;  %v2570_v15 = vld [vmem:[#allocation7 + $0x30] sm:$0xff] }
 0x4fc   :  { %2833 = vst [vmem:[#allocation24_spill] sm:$0xff] %v2570_v15 }
 0x504   :  { %v1634_v10 = vpop.eup %1633 }
 0x505   :  { %v1636_v12 = vpop.eup %1635 }
 0x506   :  { %v1638_v14 = vpop.eup %1637  ;;  %v982_v16 = vmul.f32 %v1636_v12, %v1634_v10  ;;  %v2830_v10 = vld [vmem:[#allocation25_spill] sm:$0xff]  ;;  %v2564_v12 = vld [vmem:[#allocation7 + $0x38] sm:$0xff] }
 0x507   :  { %v981_v17 = vmul.f32 %v1638_v14, %v2324_v57  ;;  %v1640_v22 = vpop.eup %1639  ;;  %v2532_v57 = vld [vmem:[#allocation7 + $0xb8] sm:$0xff]  ;;  %2831 = vst [vmem:[#allocation22_spill] sm:$0xff] %v2564_v12  ;;  %v2567_v14 = vld [vmem:[#allocation7 + $0x20] sm:$0xff] }
 0x508   :  { %2832 = vst [vmem:[#allocation30_spill] sm:$0xff] %v2567_v14 }
 0x509   :  { %v2488_v19 = vadd.f32 %v982_v16, %v981_v17  ;;  %v2573_v16 = vld [vmem:[#allocation7 + $0x8] sm:$0xff]  ;;  %v2576_v17 = vld [vmem:[#allocation7 + $0x18] sm:$0xff] }
 0x50a   :  { %2834 = vst [vmem:[#allocation31_spill] sm:$0xff] %v2573_v16  ;;  %2835 = vst [vmem:[#allocation26_spill] sm:$0xff] %v2576_v17 }
 0x50b   :  { %1641 = vtanh.f32 %v2488_v19 }
 0x518   :  { %v1642_v18 = vpop.eup %1641 }
 0x519   :  { %v985_v21 = vmul.f32 %v1642_v18, %v1640_v22  ;;  %v2579_v22 = vld [vmem:[#allocation7] sm:$0xff]  ;;  %v2837_v18 = vmov 0.0  }
 0x51a   :  { %2836 = vst [vmem:[#allocation32_spill] sm:$0xff] %v2579_v22 }
 0x51b   :  { %1056 = vmatmul.mubr.f32.vlgmr.msra.gmra.mxu0 %v985_v21  ;;  %1127 = vmatmul.mubr.f32.vlgmr.msra.gmra.mxu1 %v985_v21  ;;  %v2583_v21 = vld [vmem:[#allocation7 + $0x10] sm:$0xff] }
 0x51c   :  { %1167 = vmatpush1.msra.mxu0 %v2327_v48  ;;  %1238 = vmatpush1.msra.mxu1 %v2330_v50  ;;  %2838 = vst [vmem:[#allocation14_spill] sm:$0xff] %v2583_v21 }
 0x51d   :  { %1168 = vmatprep.subr.mxu0 %v2333_v46  ;;  %1239 = vmatprep.subr.mxu1 %v2336_v59 }
 0x51e   :  { %1169 = vmatpush1.msra.mxu0 %v2339_v60  ;;  %1240 = vmatpush1.msra.mxu1 %v2342_v52 }
 0x51f   :  { %1170 = vmatprep.subr.mxu0 %v2345_v9  ;;  %1241 = vmatprep.subr.mxu1 %v2348_v56 }
 0x520   :  { %1171 = vmatpush1.msra.mxu0 %v2351_v62  ;;  %1242 = vmatpush1.msra.mxu1 %v2354_v2 }
 0x521   :  { %1172 = vmatprep.subr.mxu0 %v2357_v4  ;;  %1243 = vmatprep.subr.mxu1 %v2360_v6 }
 0x522   :  { %1173 = vmatpush1.msra.mxu0 %v2363_v8  ;;  %1244 = vmatpush1.msra.mxu1 %v2366_v11 }
 0x523   :  { %1174 = vmatprep.subr.mxu0 %v2369_v13  ;;  %1245 = vmatprep.subr.mxu1 %v2372_v23 }
 0x524   :  { %1175 = vmatpush1.msra.mxu0 %v2375_v24  ;;  %1246 = vmatpush1.msra.mxu1 %v2378_v25 }
 0x525   :  { %1176 = vmatprep.subr.mxu0 %v2381_v26  ;;  %1247 = vmatprep.subr.mxu1 %v2384_v27 }
 0x526   :  { %1177 = vmatpush1.msra.mxu0 %v2387_v28  ;;  %1248 = vmatpush1.msra.mxu1 %v2390_v29 }
 0x527   :  { %1178 = vmatprep.subr.mxu0 %v2393_v30  ;;  %1249 = vmatprep.subr.mxu1 %v2396_v31 }
 0x528   :  { %1179 = vmatpush1.msra.mxu0 %v2399_v32  ;;  %1250 = vmatpush1.msra.mxu1 %v2402_v33 }
 0x529   :  { %1180 = vmatprep.subr.mxu0 %v2405_v34  ;;  %1251 = vmatprep.subr.mxu1 %v2408_v35 }
 0x52a   :  { %1181 = vmatpush1.msra.mxu0 %v2411_v36  ;;  %1252 = vmatpush1.msra.mxu1 %v2414_v37 }
 0x52b   :  { %1182 = vmatprep.subr.mxu0 %v2417_v38  ;;  %1253 = vmatprep.subr.mxu1 %v2420_v39 }
 0x52c   :  { %1183 = vmatpush1.msra.mxu0 %v2423_v40  ;;  %1254 = vmatpush1.msra.mxu1 %v2426_v41 }
 0x52d   :  { %1184 = vmatprep.subr.mxu0 %v2429_v43  ;;  %1255 = vmatprep.subr.mxu1 %v2432_v55 }
 0x52e   :  { %1185 = vmatpush1.msra.mxu0 %v2435_v42  ;;  %1256 = vmatpush1.msra.mxu1 %v2528_v20 }
 0x52f   :  { %1186 = vmatprep.subr.mxu0 %v2439_v53  ;;  %1257 = vmatprep.subr.mxu1 %v2532_v57 }
 0x530   :  { %1187 = vmatpush1.msra.mxu0 %v2443_v63  ;;  %1258 = vmatpush1.msra.mxu1 %v2536_v51 }
 0x531   :  { %1188 = vmatprep.subr.mxu0 %v2447_v61  ;;  %1259 = vmatprep.subr.mxu1 %v2540_v3 }
 0x532   :  { %1189 = vmatpush1.msra.mxu0 %v2451_v44  ;;  %1260 = vmatpush1.msra.mxu1 %v2544_v5 }
 0x533   :  { %1190 = vmatprep.subr.mxu0 %v2455_v45  ;;  %1261 = vmatprep.subr.mxu1 %v2548_v54  ;;  %v989_v54 = vld [vmem:[#allocation4 + $0xb0] sm:$0xff] }
 0x534   :  { %1191 = vmatpush1.msra.mxu0 %v2459_v47  ;;  %1262 = vmatpush1.msra.mxu1 %v2552_v58  ;;  %v990_v58 = vld [vmem:[#allocation4 + $0xb8] sm:$0xff] }
 0x535   :  { %1192 = vmatprep.subr.mxu0 %v2463_v49  ;;  %1263 = vmatprep.subr.mxu1 %v2556_v0 }
 0x536   :  { %1193 = vmatpush1.msra.mxu0 %v2828_v1  ;;  %1264 = vmatpush1.msra.mxu1 %v2560_v7 }
 0x537   :  { %1194 = vmatprep.subr.mxu0 %v2830_v10  ;;  %1265 = vmatprep.subr.mxu1 %v2564_v12  ;;  %v988_v10 = vld [vmem:[#allocation4 + $0xa8] sm:$0xff] }
 0x538   :  { %1195 = vmatpush1.msra.mxu0 %v2567_v14  ;;  %1266 = vmatpush1.msra.mxu1 %v2570_v15  ;;  %v2839_v15 = vld [vmem:[#allocation13_spill] sm:$0xff]  ;;  %v2840_v14 = vld [vmem:[#allocation18_spill] sm:$0xff] }
 0x539   :  { %1196 = vmatprep.subr.mxu0 %v2573_v16  ;;  %1267 = vmatprep.subr.mxu1 %v2576_v17  ;;  %v987_v16 = vld [vmem:[#allocation4 + $0xa0] sm:$0xff] }
 0x53a   :  { %1197 = vmatpush1.msra.mxu0 %v2579_v22  ;;  %1230 = vmatprep.mubr.f32.mxu0 %v2837_v18 }
 0x53b   :  { %1268 = vmatpush1.msra.mxu1 %v2583_v21  ;;  %1301 = vmatprep.mubr.f32.mxu1 %v2837_v18 }
 0x53c   :  { %1341 = vmatprep.subr.mxu0 %v2839_v15  ;;  %1412 = vmatprep.subr.mxu1 %v2840_v14 }
 0x5db   :  { %v1057_v12 = vpop.f32.mrf.mxu0  ;;  %v1128_v22 = vpop.f32.mrf.mxu1 }
 0x5dc   :  { %v1133_v17 = vadd.f32 %v1057_v12, %v987_v16  ;;  %v1135_v15 = vadd.f32 %v1128_v22, %v989_v54 }
 0x5dd   :  { %v1059_v7 = vpop.f32.mrf.mxu0  ;;  %v1130_v47 = vpop.f32.mrf.mxu1 }
 0x5de   :  { %v1548_v1 = vmul.f32 -1.442695, %v1133_v17  ;;  %v1134_v0 = vadd.f32 %v1059_v7, %v988_v10  ;;  %v1136_v21 = vadd.f32 %v1130_v47, %v990_v58 }
 0x5e0   :  { %1643 = vpow2.f32 %v1548_v1  ;;  %v1549_v49 = vmul.f32 -1.442695, %v1134_v0  ;;  %v1550_v18 = vmul.f32 -1.442695, %v1136_v21 }
 0x5e2   :  { %1645 = vpow2.f32 %v1549_v49 }
 0x5e3   :  { %1647 = vpow2.f32 %v1550_v18  ;;  %v1337_v18 = vld [vmem:[#allocation4 + $0xe0] sm:$0xff] }
 0x5ed   :  { %v1644_v45 = vpop.eup %1643 }
 0x5ee   :  { %v1140_v5 = vadd.f32 1.0, %v1644_v45 }
 0x5ef   :  { %v1646_v14 = vpop.eup %1645 }
 0x5f0   :  { %1649 = vrcp.f32 %v1140_v5  ;;  %v1146_v44 = vadd.f32 1.0, %v1646_v14  ;;  %v1648_v12 = vpop.eup %1647 }
 0x5f1   :  { %1651 = vtanh.f32 %v1135_v15  ;;  %v1153_v0 = vadd.f32 1.0, %v1648_v12  ;;  %v1338_v15 = vld [vmem:[#allocation4 + $0xe8] sm:$0xff] }
 0x5f2   :  { %1653 = vrcp.f32 %v1146_v44 }
 0x5f3   :  { %1655 = vrcp.f32 %v1153_v0 }
 0x5fd   :  { %v1650_v7 = vpop.eup %1649 }
 0x5fe   :  { %v1652_v1 = vpop.eup %1651 }
 0x5ff   :  { %v1654_v10 = vpop.eup %1653  ;;  %v1157_v49 = vmul.f32 %v1652_v1, %v1650_v7 }
 0x600   :  { %v1156_v16 = vmul.f32 %v1654_v10, %v2488_v19  ;;  %v1656_v45 = vpop.eup %1655 }
 0x602   :  { %v2590_v47 = vadd.f32 %v1157_v49, %v1156_v16  ;;  %v1340_v49 = vld [vmem:[#allocation4 + $0xf8] sm:$0xff] }
 0x604   :  { %1657 = vtanh.f32 %v2590_v47 }
 0x611   :  { %v1658_v54 = vpop.eup %1657 }
 0x612   :  { %v1160_v58 = vmul.f32 %v1658_v54, %v1656_v45  ;;  %v1339_v45 = vld [vmem:[#allocation4 + $0xf0] sm:$0xff] }
 0x614   :  { %1231 = vmatmul.mubr.f32.vlgmr.msra.gmra.mxu0 %v1160_v58  ;;  %1302 = vmatmul.mubr.f32.vlgmr.msra.gmra.mxu1 %v1160_v58 }
 0x615   :  { %1342 = vmatpush1.msra.mxu0 %v2327_v48  ;;  %1413 = vmatpush1.msra.mxu1 %v2330_v50  ;;  %v2841_v48 = vld [vmem:[#allocation15_spill] sm:$0xff] }
 0x616   :  { %1343 = vmatprep.subr.mxu0 %v2333_v46  ;;  %1414 = vmatprep.subr.mxu1 %v2336_v59  ;;  %v2842_v50 = vld [vmem:[#allocation27_spill] sm:$0xff]  ;;  %v2843_v46 = vld [vmem:[#allocation21_spill] sm:$0xff] }
 0x617   :  { %1344 = vmatpush1.msra.mxu0 %v2339_v60  ;;  %1415 = vmatpush1.msra.mxu1 %v2342_v52  ;;  %v2844_v59 = vld [vmem:[#allocation19_spill] sm:$0xff]  ;;  %v2845_v60 = vld [vmem:[#allocation16_spill] sm:$0xff] }
 0x618   :  { %1345 = vmatprep.subr.mxu0 %v2345_v9  ;;  %1416 = vmatprep.subr.mxu1 %v2348_v56  ;;  %v2846_v52 = vld [vmem:[#allocation28_spill] sm:$0xff]  ;;  %v2847_v9 = vld [vmem:[#allocation23_spill] sm:$0xff] }
 0x619   :  { %1346 = vmatpush1.msra.mxu0 %v2351_v62  ;;  %1417 = vmatpush1.msra.mxu1 %v2354_v2  ;;  %v2848_v56 = vld [vmem:[#allocation20_spill] sm:$0xff]  ;;  %v2849_v62 = vld [vmem:[#allocation17_spill] sm:$0xff] }
 0x61a   :  { %1347 = vmatprep.subr.mxu0 %v2357_v4  ;;  %1418 = vmatprep.subr.mxu1 %v2360_v6  ;;  %v2850_v2 = vld [vmem:[#allocation29_spill] sm:$0xff]  ;;  %v2852_v6 = vld [vmem:[#allocation22_spill] sm:$0xff] }
 0x61b   :  { %1348 = vmatpush1.msra.mxu0 %v2363_v8  ;;  %1419 = vmatpush1.msra.mxu1 %v2366_v11  ;;  %v2851_v4 = vld [vmem:[#allocation25_spill] sm:$0xff]  ;;  %v2853_v8 = vld [vmem:[#allocation30_spill] sm:$0xff]  ;;  %v2854_v11 = vld [vmem:[#allocation24_spill] sm:$0xff] }
 0x61c   :  { %1349 = vmatprep.subr.mxu0 %v2369_v13  ;;  %1420 = vmatprep.subr.mxu1 %v2372_v23  ;;  %v2855_v13 = vld [vmem:[#allocation31_spill] sm:$0xff]  ;;  %v2856_v23 = vld [vmem:[#allocation26_spill] sm:$0xff] }
 0x61d   :  { %1350 = vmatpush1.msra.mxu0 %v2375_v24  ;;  %1421 = vmatpush1.msra.mxu1 %v2378_v25  ;;  %v2857_v24 = vld [vmem:[#allocation32_spill] sm:$0xff]  ;;  %v2858_v25 = vmov 0.0  }
 0x61e   :  { %1351 = vmatprep.subr.mxu0 %v2381_v26  ;;  %1422 = vmatprep.subr.mxu1 %v2384_v27  ;;  %v2859_v26 = vld [vmem:[#allocation14_spill] sm:$0xff]  ;;  %v1162_v27 = vld [vmem:[#allocation4 + $0xc0] sm:$0xff] }
 0x61f   :  { %1352 = vmatpush1.msra.mxu0 %v2387_v28  ;;  %1423 = vmatpush1.msra.mxu1 %v2390_v29  ;;  %v1163_v29 = vld [vmem:[#allocation4 + $0xc8] sm:$0xff] }
 0x620   :  { %1353 = vmatprep.subr.mxu0 %v2393_v30  ;;  %1424 = vmatprep.subr.mxu1 %v2396_v31 }
 0x621   :  { %1354 = vmatpush1.msra.mxu0 %v2399_v32  ;;  %1425 = vmatpush1.msra.mxu1 %v2402_v33 }
 0x622   :  { %1355 = vmatprep.subr.mxu0 %v2405_v34  ;;  %1426 = vmatprep.subr.mxu1 %v2408_v35 }
 0x623   :  { %1356 = vmatpush1.msra.mxu0 %v2411_v36  ;;  %1427 = vmatpush1.msra.mxu1 %v2414_v37  ;;  %v1165_v36 = vld [vmem:[#allocation4 + $0xd8] sm:$0xff] }
 0x624   :  { %1357 = vmatprep.subr.mxu0 %v2417_v38  ;;  %1428 = vmatprep.subr.mxu1 %v2420_v39  ;;  %v1164_v39 = vld [vmem:[#allocation4 + $0xd0] sm:$0xff] }
 0x625   :  { %1358 = vmatpush1.msra.mxu0 %v2423_v40  ;;  %1429 = vmatpush1.msra.mxu1 %v2426_v41 }
 0x626   :  { %1359 = vmatprep.subr.mxu0 %v2429_v43  ;;  %1430 = vmatprep.subr.mxu1 %v2432_v55 }
 0x627   :  { %1360 = vmatpush1.msra.mxu0 %v2435_v42  ;;  %1431 = vmatpush1.msra.mxu1 %v2528_v20 }
 0x628   :  { %1361 = vmatprep.subr.mxu0 %v2439_v53  ;;  %1432 = vmatprep.subr.mxu1 %v2532_v57 }
 0x629   :  { %1362 = vmatpush1.msra.mxu0 %v2443_v63  ;;  %1433 = vmatpush1.msra.mxu1 %v2536_v51 }
 0x62a   :  { %1363 = vmatprep.subr.mxu0 %v2447_v61  ;;  %1434 = vmatprep.subr.mxu1 %v2540_v3 }
 0x62b   :  { %1364 = vmatpush1.msra.mxu0 %v2841_v48  ;;  %1435 = vmatpush1.msra.mxu1 %v2842_v50 }
 0x62c   :  { %1365 = vmatprep.subr.mxu0 %v2843_v46  ;;  %1436 = vmatprep.subr.mxu1 %v2844_v59 }
 0x62d   :  { %1366 = vmatpush1.msra.mxu0 %v2845_v60  ;;  %1437 = vmatpush1.msra.mxu1 %v2846_v52 }
 0x62e   :  { %1367 = vmatprep.subr.mxu0 %v2847_v9  ;;  %1438 = vmatprep.subr.mxu1 %v2848_v56 }
 0x62f   :  { %1368 = vmatpush1.msra.mxu0 %v2849_v62  ;;  %1439 = vmatpush1.msra.mxu1 %v2850_v2 }
 0x630   :  { %1369 = vmatprep.subr.mxu0 %v2851_v4  ;;  %1440 = vmatprep.subr.mxu1 %v2852_v6 }
 0x631   :  { %1370 = vmatpush1.msra.mxu0 %v2853_v8  ;;  %1441 = vmatpush1.msra.mxu1 %v2854_v11 }
 0x632   :  { %1371 = vmatprep.subr.mxu0 %v2855_v13  ;;  %1442 = vmatprep.subr.mxu1 %v2856_v23 }
 0x633   :  { %1372 = vmatpush1.msra.mxu0 %v2857_v24  ;;  %1405 = vmatprep.mubr.f32.mxu0 %v2858_v25 }
 0x634   :  { %1443 = vmatpush1.msra.mxu1 %v2859_v26  ;;  %1476 = vmatprep.mubr.f32.mxu1 %v2858_v25 }
 0x6d4   :  { %v1232_v28 = vpop.f32.mrf.mxu0  ;;  %v1303_v34 = vpop.f32.mrf.mxu1 }
 0x6d5   :  { %v1308_v30 = vadd.f32 %v1232_v28, %v1162_v27  ;;  %v1310_v43 = vadd.f32 %v1303_v34, %v1164_v39 }
 0x6d6   :  { %v1234_v31 = vpop.f32.mrf.mxu0  ;;  %v1305_v37 = vpop.f32.mrf.mxu1 }
 0x6d7   :  { %v1551_v32 = vmul.f32 -1.442695, %v1308_v30  ;;  %v1309_v33 = vadd.f32 %v1234_v31, %v1163_v29  ;;  %v1311_v38 = vadd.f32 %v1305_v37, %v1165_v36 }
 0x6d9   :  { %1659 = vpow2.f32 %v1551_v32  ;;  %v1552_v35 = vmul.f32 -1.442695, %v1309_v33  ;;  %v1553_v40 = vmul.f32 -1.442695, %v1311_v38 }
 0x6db   :  { %1661 = vpow2.f32 %v1552_v35 }
 0x6dc   :  { %1663 = vpow2.f32 %v1553_v40 }
 0x6e6   :  { %v1660_v41 = vpop.eup %1659 }
 0x6e7   :  { %v1315_v55 = vadd.f32 1.0, %v1660_v41 }
 0x6e8   :  { %v1662_v42 = vpop.eup %1661 }
 0x6e9   :  { %1665 = vrcp.f32 %v1315_v55  ;;  %v1321_v53 = vadd.f32 1.0, %v1662_v42  ;;  %v1664_v63 = vpop.eup %1663 }
 0x6ea   :  { %1667 = vtanh.f32 %v1310_v43  ;;  %v1328_v20 = vadd.f32 1.0, %v1664_v63 }
 0x6eb   :  { %1669 = vrcp.f32 %v1321_v53 }
 0x6ec   :  { %1671 = vrcp.f32 %v1328_v20 }
 0x6f6   :  { %v1666_v61 = vpop.eup %1665 }
 0x6f7   :  { %v1668_v44 = vpop.eup %1667 }
 0x6f8   :  { %v1670_v19 = vpop.eup %1669  ;;  %v1332_v57 = vmul.f32 %v1668_v44, %v1666_v61 }
 0x6f9   :  { %v1331_v51 = vmul.f32 %v1670_v19, %v2590_v47  ;;  %v1672_v5 = vpop.eup %1671 }
 0x6fb   :  { %v1333_v3 = vadd.f32 %v1332_v57, %v1331_v51 }
 0x6fd   :  { %1673 = vtanh.f32 %v1333_v3 }
 0x70a   :  { %v1674_v17 = vpop.eup %1673 }
 0x70b   :  { %v1335_v22 = vmul.f32 %v1674_v17, %v1672_v5 }
 0x70d   :  { %1406 = vmatmul.mubr.f32.vlgmr.msra.gmra.mxu0 %v1335_v22  ;;  %1477 = vmatmul.mubr.f32.vlgmr.msra.gmra.mxu1 %v1335_v22 }
 0x7cd   :  { %v1407_v21 = vpop.f32.mrf.mxu0  ;;  %v1478_v10 = vpop.f32.mrf.mxu1 }
 0x7ce   :  { %v1483_v14 = vadd.f32 %v1407_v21, %v1337_v18  ;;  %v1485_v48 = vadd.f32 %v1478_v10, %v1339_v45 }
 0x7cf   :  { %v1409_v12 = vpop.f32.mrf.mxu0  ;;  %v1480_v16 = vpop.f32.mrf.mxu1 }
 0x7d0   :  { %v1554_v7 = vmul.f32 -1.442695, %v1483_v14  ;;  %v1484_v1 = vadd.f32 %v1409_v12, %v1338_v15  ;;  %v1486_v47 = vadd.f32 %v1480_v16, %v1340_v49 }
 0x7d2   :  { %1675 = vpow2.f32 %v1554_v7  ;;  %v1555_v0 = vmul.f32 -1.442695, %v1484_v1  ;;  %v1556_v54 = vmul.f32 -1.442695, %v1486_v47 }
 0x7d4   :  { %1677 = vpow2.f32 %v1555_v0 }
 0x7d5   :  { %1679 = vpow2.f32 %v1556_v54 }
 0x7df   :  { %v1676_v58 = vpop.eup %1675 }
 0x7e0   :  { %v1490_v50 = vadd.f32 1.0, %v1676_v58 }
 0x7e1   :  { %v1678_v46 = vpop.eup %1677 }
 0x7e2   :  { %1681 = vrcp.f32 %v1490_v50  ;;  %v1496_v59 = vadd.f32 1.0, %v1678_v46  ;;  %v1680_v60 = vpop.eup %1679 }
 0x7e3   :  { %1683 = vtanh.f32 %v1485_v48  ;;  %v1503_v62 = vadd.f32 1.0, %v1680_v60 }
 0x7e4   :  { %1685 = vrcp.f32 %v1496_v59 }
 0x7e5   :  { %1687 = vrcp.f32 %v1503_v62 }
 0x7ef   :  { %v1682_v52 = vpop.eup %1681 }
 0x7f0   :  { %v1684_v9 = vpop.eup %1683 }
 0x7f1   :  { %v1686_v56 = vpop.eup %1685  ;;  %v1507_v2 = vmul.f32 %v1684_v9, %v1682_v52 }
 0x7f2   :  { %v1506_v4 = vmul.f32 %v1686_v56, %v1333_v3  ;;  %v1688_v8 = vpop.eup %1687 }
 0x7f4   :  { %v1508_v6 = vadd.f32 %v1507_v2, %v1506_v4 }
 0x7f6   :  { %1689 = vtanh.f32 %v1508_v6 }
 0x803   :  { %v1690_v11 = vpop.eup %1689 }
 0x804   :  { %v1510_v13 = vmul.f32 %v1690_v11, %v1688_v8 }
 0x806   :  { %1516 = vst [vmem:[#allocation9] sm:$0xff] %v1510_v13 }
 0x807   :  { %1806 = shalt.err (!%p1803_p0)
}
 0x808   :  { %1526 = dma.vmem_to_hbm [thread:$0]  %s1524_s1, 128, %s2663_s2, [#allocation6]  }
 0x809   :  { %1819 = dma.done.wait [#allocation6], 128  }
 0x80a   :  { %1820 = vsyncadd [#allocation6], 4294967168 }
 0x80b   :  { %1530 = vsyncpa [#allocation5], 1 }
 0x80c   :  { %1531 = vsyncpa [#allocation8], 1 }
 0x80d   :  { %1532 = vsyncpa [#allocation6], 1 }

</bundles_post_ra>
